<compile_context>
chip_gen: v7x
topology: tpu7x:2x2x1
jax: 0.10.0
libtpu: 0.0.40
codegen_flags: <defaults>
</compile_context>

<pallas_src>
import functools

import jax
import jax.numpy as jnp
from jax import lax
from jax.experimental import pallas as pl
from jax.experimental.pallas import tpu as pltpu

_PAD = 8  # aligned left-halo width (sublanes) of the in-VMEM zero border


def _round_up(x, m):
    return ((x + m - 1) // m) * m


def _vmem_limit_bytes(block_bytes, scratch_bytes=0):
    # Double-buffered pipeline blocks + persistent scratch + headroom; clamped
    # to v7x's 64 MiB physical VMEM (larger shapes need the tiling TODO above).
    need = 2 * block_bytes + scratch_bytes + (8 << 20)
    return int(min(max(need, 32 << 20), 64 << 20))


# ------------------------------------------- fused qkv 1x1 conv + 3x3 dwconv
def _qkv_dw_kernel(x_ref, wq_ref, bq_ref, wd_ref, bd_ref, o_ref, pad_ref,
                   *, H, W, Wp):
    """One batch element per grid step.

    x:  (1, C, HW) channels-first (raw NCHW view)   wq: (C, 3C)   bq: (1, 3C)
    wd: (9, 1, 3C)   bd: (1, 3C)   o: (1, HW, 3C) channels-last
    pad scratch: (H+2, Wp, 3C) at model dtype; interior at [1:H+1, _PAD:_PAD+W].
    """
    c3 = wq_ref.shape[1]
    pdt = pad_ref.dtype

    # 1x1 conv on the MXU: qkv[n, oc] = sum_c x[c, n] * wq_t[c, oc]  (f32 acc).
    qkv = lax.dot_general(x_ref[0], wq_ref[...], (((0,), (0,)), ((), ())),
                          preferred_element_type=jnp.float32)
    qkv = qkv + bq_ref[...].astype(jnp.float32)                    # (HW, 3C)

    # Re-zero only the halo each step (megacore-safe; interior is overwritten
    # every step, so no full-scratch memset is needed).
    pad_ref[0:1, :, :] = jnp.zeros((1, Wp, c3), pdt)
    pad_ref[H + 1:H + 2, :, :] = jnp.zeros((1, Wp, c3), pdt)
    pad_ref[1:H + 1, 0:_PAD, :] = jnp.zeros((H, _PAD, c3), pdt)
    pad_ref[1:H + 1, _PAD + W:Wp, :] = jnp.zeros((H, Wp - _PAD - W, c3), pdt)
    # Aligned interior store at sublane offset _PAD.
    pad_ref[1:H + 1, _PAD:_PAD + W, :] = qkv.reshape(H, W, c3).astype(pdt)

    # 3x3 depthwise conv (VPU, f32 accumulation): 3 column-shifted loads once
    # (2 unaligned instead of 6); the row (dh) shifts are sliced off the
    # loaded values along the major axis (cheap).
    cols = [pad_ref[:, _PAD - 1 + dw:_PAD - 1 + dw + W, :] for dw in range(3)]
    acc = jnp.zeros((H, W, c3), jnp.float32) + bd_ref[...].astype(jnp.float32)
    for dh in range(3):
        for dw in range(3):
            patch = cols[dw][dh:dh + H].astype(jnp.float32)
            acc = acc + patch * wd_ref[dh * 3 + dw].astype(jnp.float32)
    o_ref[0] = acc.reshape(H * W, c3).astype(o_ref.dtype)


def qkv_dwconv(x_cf, wq_t, bq, wd9, bd, *, H, W):
    """x_cf: (B, C, HW) -> (B, HW, 3C); fused qkv 1x1 conv + 3x3 depthwise conv."""
    B, C, HW = x_cf.shape
    C3 = wq_t.shape[1]
    Wp = _PAD + _round_up(W + 1, 8)
    esz = jnp.dtype(x_cf.dtype).itemsize
    block_bytes = (C * HW + C * C3 + 11 * C3 + HW * C3) * esz
    scratch_bytes = (H + 2) * Wp * C3 * esz
    kernel = functools.partial(_qkv_dw_kernel, H=H, W=W, Wp=Wp)
    return pl.pallas_call(
        kernel,
        out_shape=jax.ShapeDtypeStruct((B, HW, C3), x_cf.dtype),
        grid=(B,),
        in_specs=[
            pl.BlockSpec((1, C, HW), lambda i: (i, 0, 0)),
            pl.BlockSpec((C, C3), lambda i: (0, 0)),
            pl.BlockSpec((1, C3), lambda i: (0, 0)),
            pl.BlockSpec((9, 1, C3), lambda i: (0, 0, 0)),
            pl.BlockSpec((1, C3), lambda i: (0, 0)),
        ],
        out_specs=pl.BlockSpec((1, HW, C3), lambda i: (i, 0, 0)),
        scratch_shapes=[pltpu.VMEM((H + 2, Wp, C3), x_cf.dtype)],
        compiler_params=pltpu.CompilerParams(
            dimension_semantics=("parallel",),
            vmem_limit_bytes=_vmem_limit_bytes(block_bytes, scratch_bytes)),
    )(x_cf, wq_t, bq, wd9, bd)


# ----------------------------------- attention (all heads) + fused project_out
def _attn_proj_kernel(qkv_ref, temp_ref, mask_ref, wp_ref, bp_ref, o_ref):
    """One batch element per grid step; all heads as one block-diagonal problem.

    qkv:  (1, HW, 3C)    temp: (1, C) per-channel temperature (head-broadcast)
    mask: (C, C) f32 additive bias, 0 inside a head block / -1e30 outside
    wp:   (C, C) = W_proj^T (Cin, Cout)    bp: (C, 1)
    o:    (1, C, HW) channels-first (lane-dense, directly NCHW-shaped).
    """
    qkv = qkv_ref[0]
    HW, C3 = qkv.shape
    C = C3 // 3
    dtype = qkv.dtype
    eps2 = 1e-24  # (1e-12)^2: rsqrt(max(ss, eps^2)) == 1 / max(||.||, eps)

    q = qkv[:, 0:C].astype(jnp.float32)
    k = qkv[:, C:2 * C].astype(jnp.float32)
    v = qkv[:, 2 * C:3 * C]

    # Per-channel L2 normalization over HW (f32 stats, rsqrt on the EUP); the
    # per-head temperature is folded into the q scale (length-C row vector).
    q_scale = lax.rsqrt(jnp.maximum(jnp.sum(q * q, axis=0, keepdims=True), eps2))
    k_scale = lax.rsqrt(jnp.maximum(jnp.sum(k * k, axis=0, keepdims=True), eps2))
    qn = (q * (q_scale * temp_ref[...].astype(jnp.float32))).astype(dtype)  # (HW, C)
    kn = (k * k_scale).astype(dtype)

    # One Gram matmul for ALL heads: attn[i, j] = sum_n qn[n, i] kn[n, j].
    attn = lax.dot_general(qn, kn, (((0,), (0,)), ((), ())),
                           preferred_element_type=jnp.float32)              # (C, C)
    # Mask cross-head entries (to ~-inf) BEFORE the softmax.
    attn = attn + mask_ref[...]
    attn = attn - jnp.max(attn, axis=-1, keepdims=True)
    e = jnp.exp(attn)
    p = (e / jnp.sum(e, axis=-1, keepdims=True)).astype(dtype)   # block-diag (C, C)

    # out^T[i, n] = sum_j p[i, j] v[n, j]                        -> (C, HW)
    out_t = lax.dot_general(p, v, (((1,), (1,)), ((), ())),
                            preferred_element_type=jnp.float32)
    # Fused project_out, already transposed: y^T[o, n] = sum_i wp[i, o] out^T[i, n]
    y_t = lax.dot_general(wp_ref[...], out_t.astype(dtype), (((0,), (0,)), ((), ())),
                          preferred_element_type=jnp.float32)               # (C, HW)
    o_ref[0] = (y_t + bp_ref[...].astype(jnp.float32)).astype(o_ref.dtype)


def attn_project(qkv, temp_row, mask_bias, wp_t, bp):
    """qkv: (B, HW, 3C) -> (B, C, HW); block-diagonal multi-head channel
    attention fused with project_out; output is channels-first (NCHW-ready)."""
    B, HW, C3 = qkv.shape
    C = C3 // 3
    esz = jnp.dtype(qkv.dtype).itemsize
    block_bytes = (HW * C3 + C + 2 * C * C + C + C * HW) * esz + 4 * C * C
    return pl.pallas_call(
        _attn_proj_kernel,
        out_shape=jax.ShapeDtypeStruct((B, C, HW), qkv.dtype),
        grid=(B,),
        in_specs=[
            pl.BlockSpec((1, HW, C3), lambda i: (i, 0, 0)),
            pl.BlockSpec((1, C), lambda i: (0, 0)),
            pl.BlockSpec((C, C), lambda i: (0, 0)),
            pl.BlockSpec((C, C), lambda i: (0, 0)),
            pl.BlockSpec((C, 1), lambda i: (0, 0)),
        ],
        out_specs=pl.BlockSpec((1, C, HW), lambda i: (i, 0, 0)),
        compiler_params=pltpu.CompilerParams(
            dimension_semantics=("parallel",),
            vmem_limit_bytes=_vmem_limit_bytes(block_bytes)),
    )(qkv, temp_row, mask_bias, wp_t, bp)


# ------------------------------------------------------------------- forward
def attention_forward(x, params, num_heads):
    """x: (B, C, H, W) NCHW, mirrors Attention.forward of the PyTorch module."""
    B, C, H, W = x.shape
    HW = H * W
    cph = C // num_heads

    x_cf = x.reshape(B, C, HW)  # free view of NCHW; no HBM transpose anywhere

    wq_t = jnp.transpose(params["w_qkv"])                          # (C, 3C)
    bq = params["b_qkv"][None, :]                                  # (1, 3C)
    wd9 = jnp.transpose(params["w_dw"], (1, 2, 0)).reshape(9, 1, 3 * C)
    bd = params["b_dw"][None, :]                                   # (1, 3C)
    wp_t = jnp.transpose(params["w_proj"])                         # (Cin, Cout)
    bp = params["b_proj"][:, None]                                 # (C, 1)

    # Per-channel temperature row (each head's value broadcast over its channels).
    temp_row = jnp.repeat(params["temperature"].reshape(num_heads), cph)[None, :]
    # Additive block-diagonal mask: 0 within a head's (cph x cph) block, -1e30 off it.
    head_id = jnp.arange(C, dtype=jnp.int32) // cph
    mask_bias = jnp.where(head_id[:, None] == head_id[None, :],
                          0.0, -1e30).astype(jnp.float32)

    qkv = qkv_dwconv(x_cf, wq_t, bq, wd9, bd, H=H, W=W)            # (B, HW, 3C)
    y_cf = attn_project(qkv, temp_row, mask_bias, wp_t, bp)        # (B, C, HW)
    return y_cf.reshape(B, C, H, W)


# -------------------------------------------------- pure-JAX reference check
def ref_forward(x, params, num_heads):
    B, C, H, W = x.shape
    dn = ("NCHW", "OIHW", "NCHW")
    qkv = lax.conv_general_dilated(x, params["w_qkv"][:, :, None, None],
                                   (1, 1), "VALID", dimension_numbers=dn)
    qkv = qkv + params["b_qkv"][None, :, None, None]
    qkv = lax.conv_general_dilated(qkv, params["w_dw"][:, None, :, :],
                                   (1, 1), ((1, 1), (1, 1)),
                                   dimension_numbers=dn,
                                   feature_group_count=3 * C)
    qkv = qkv + params["b_dw"][None, :, None, None]
    q, k, v = jnp.split(qkv, 3, axis=1)
    cph = C // num_heads
    rs = lambda t: t.reshape(B, num_heads, cph, H * W)
    q, k, v = rs(q), rs(k), rs(v)
    nrm = lambda t: t / jnp.maximum(jnp.linalg.norm(t, axis=-1, keepdims=True), 1e-12)
    q, k = nrm(q), nrm(k)
    attn = jnp.einsum("bhcn,bhdn->bhcd", q, k)
    attn = attn * params["temperature"][None, :, None, None]
    attn = jax.nn.softmax(attn, axis=-1)
    out = jnp.einsum("bhcd,bhdn->bhcn", attn, v).reshape(B, C, H, W)
    y = lax.conv_general_dilated(out, params["w_proj"][:, :, None, None],
                                 (1, 1), "VALID", dimension_numbers=dn)
    return y + params["b_proj"][None, :, None, None]


if __name__ == "__main__":
    dim, num_heads, B, H, W = 16, 4, 2, 16, 16
    key = jax.random.PRNGKey(0)
    ks = jax.random.split(key, 7)
    # deterministic synthetic parameters (module __init__ shapes, bias=True)
    params = {
        "w_qkv": 0.2 * jax.random.normal(ks[0], (3 * dim, dim), jnp.float32),
        "b_qkv": 0.1 * jax.random.normal(ks[1], (3 * dim,), jnp.float32),
        "w_dw": 0.2 * jax.random.normal(ks[2], (3 * dim, 3, 3), jnp.float32),
        "b_dw": 0.1 * jax.random.normal(ks[3], (3 * dim,), jnp.float32),
        "w_proj": 0.2 * jax.random.normal(ks[4], (dim, dim), jnp.float32),
        "b_proj": 0.1 * jax.random.normal(ks[5], (dim,), jnp.float32),
        "temperature": 1.0 + 0.1 * jnp.arange(num_heads, dtype=jnp.float32),
    }
    x = jax.random.normal(ks[6], (B, dim, H, W), jnp.float32)

    fwd = jax.jit(functools.partial(attention_forward, num_heads=num_heads))
    y = fwd(x, params)
    jax.block_until_ready(y)

    y_ref = ref_forward(x, params, num_heads)
    assert y.shape == (B, dim, H, W)
    err = float(jnp.max(jnp.abs(y - y_ref)))
    assert jnp.allclose(y, y_ref, atol=2e-4, rtol=2e-4), f"max abs err {err}"
    print("KERNEL_OK")
</pallas_src>

<mosaic_0001>
module attributes {stable_mosaic.version = 11 : i64} {
  func.func @_qkv_dw_kernel(%arg0: i32, %arg1: memref<1x16x256xf32, #tpu.memory_space<vmem>>, %arg2: memref<16x48xf32, #tpu.memory_space<vmem>>, %arg3: memref<1x48xf32, #tpu.memory_space<vmem>>, %arg4: memref<9x1x48xf32, #tpu.memory_space<vmem>>, %arg5: memref<1x48xf32, #tpu.memory_space<vmem>>, %arg6: memref<1x256x48xf32, #tpu.memory_space<vmem>>, %arg7: memref<18x32x48xf32, #tpu.memory_space<vmem>>) attributes {dimension_semantics = [#tpu.dimension_semantics<parallel>], iteration_bounds = array<i64: 2>, scalar_prefetch = 0 : i64, scratch_operands = 1 : i64, tpu.core_type = #tpu.core_type<tc>, window_params = [{transform_indices = @transform_0, window_bounds = array<i64: 1, 16, 256>}, {pipeline_mode = #tpu.pipeline_mode<synchronous>, transform_indices = @transform_1, window_bounds = array<i64: 16, 48>}, {pipeline_mode = #tpu.pipeline_mode<synchronous>, transform_indices = @transform_2, window_bounds = array<i64: 1, 48>}, {pipeline_mode = #tpu.pipeline_mode<synchronous>, transform_indices = @transform_3, window_bounds = array<i64: 9, 1, 48>}, {pipeline_mode = #tpu.pipeline_mode<synchronous>, transform_indices = @transform_4, window_bounds = array<i64: 1, 48>}, {transform_indices = @transform_5, window_bounds = array<i64: 1, 256, 48>}]} {
    %c0 = arith.constant 0 : index
    %c0_0 = arith.constant 0 : index
    %c0_1 = arith.constant 0 : index
    %0 = vector.load %arg1[%c0, %c0_0, %c0_1] : memref<1x16x256xf32, #tpu.memory_space<vmem>>, vector<1x16x256xf32>
    %1 = vector.shape_cast %0 : vector<1x16x256xf32> to vector<16x256xf32>
    %c0_2 = arith.constant 0 : index
    %c0_3 = arith.constant 0 : index
    %2 = vector.load %arg2[%c0_2, %c0_3] : memref<16x48xf32, #tpu.memory_space<vmem>>, vector<16x48xf32>
    %cst = arith.constant dense<0.000000e+00> : vector<256x48xf32>
    %3 = tpu.matmul %1, %2, %cst {dimension_numbers = #tpu.dot_dimension_numbers<[0], [0], [1], [1], [0, 1, 1, 1], [], []>} : vector<16x256xf32>, vector<16x48xf32>, vector<256x48xf32> -> vector<256x48xf32>
    %c0_4 = arith.constant 0 : index
    %c0_5 = arith.constant 0 : index
    %4 = vector.load %arg3[%c0_4, %c0_5] : memref<1x48xf32, #tpu.memory_space<vmem>>, vector<1x48xf32>
    %5 = vector.broadcast %4 : vector<1x48xf32> to vector<256x48xf32>
    %6 = arith.addf %3, %5 : vector<256x48xf32>
    %cst_6 = arith.constant 0.000000e+00 : f32
    %7 = vector.broadcast %cst_6 : f32 to vector<1x32x48xf32>
    %c0_7 = arith.constant 0 : index
    %c0_8 = arith.constant 0 : index
    %c0_9 = arith.constant 0 : index
    %8 = vector.load %arg7[%c0_7, %c0_8, %c0_9] : memref<18x32x48xf32, #tpu.memory_space<vmem>>, vector<1x32x48xf32>
    tpu.vector_store %arg7[%c0_7, %c0_8, %c0_9], %7 {strides = array<i32>} : memref<18x32x48xf32, #tpu.memory_space<vmem>>, vector<1x32x48xf32>,
    %cst_10 = arith.constant 0.000000e+00 : f32
    %9 = vector.broadcast %cst_10 : f32 to vector<1x32x48xf32>
    %c17 = arith.constant 17 : index
    %c0_11 = arith.constant 0 : index
    %c0_12 = arith.constant 0 : index
    %10 = vector.load %arg7[%c17, %c0_11, %c0_12] : memref<18x32x48xf32, #tpu.memory_space<vmem>>, vector<1x32x48xf32>
    tpu.vector_store %arg7[%c17, %c0_11, %c0_12], %9 {strides = array<i32>} : memref<18x32x48xf32, #tpu.memory_space<vmem>>, vector<1x32x48xf32>,
    %cst_13 = arith.constant 0.000000e+00 : f32
    %11 = vector.broadcast %cst_13 : f32 to vector<16x8x48xf32>
    %c1 = arith.constant 1 : index
    %c0_14 = arith.constant 0 : index
    %c0_15 = arith.constant 0 : index
    %12 = vector.load %arg7[%c1, %c0_14, %c0_15] : memref<18x32x48xf32, #tpu.memory_space<vmem>>, vector<16x8x48xf32>
    tpu.vector_store %arg7[%c1, %c0_14, %c0_15], %11 {strides = array<i32>} : memref<18x32x48xf32, #tpu.memory_space<vmem>>, vector<16x8x48xf32>,
    %cst_16 = arith.constant 0.000000e+00 : f32
    %13 = vector.broadcast %cst_16 : f32 to vector<16x8x48xf32>
    %c1_17 = arith.constant 1 : index
    %c24 = arith.constant 24 : index
    %c0_18 = arith.constant 0 : index
    %14 = vector.load %arg7[%c1_17, %c24, %c0_18] : memref<18x32x48xf32, #tpu.memory_space<vmem>>, vector<16x8x48xf32>
    tpu.vector_store %arg7[%c1_17, %c24, %c0_18], %13 {strides = array<i32>} : memref<18x32x48xf32, #tpu.memory_space<vmem>>, vector<16x8x48xf32>,
    %15 = vector.shape_cast %6 : vector<256x48xf32> to vector<16x16x48xf32>
    %c1_19 = arith.constant 1 : index
    %c8 = arith.constant 8 : index
    %c0_20 = arith.constant 0 : index
    %16 = vector.load %arg7[%c1_19, %c8, %c0_20] : memref<18x32x48xf32, #tpu.memory_space<vmem>>, vector<16x16x48xf32>
    tpu.vector_store %arg7[%c1_19, %c8, %c0_20], %15 {strides = array<i32>} : memref<18x32x48xf32, #tpu.memory_space<vmem>>, vector<16x16x48xf32>,
    %c0_21 = arith.constant 0 : index
    %c7 = arith.constant 7 : index
    %c0_22 = arith.constant 0 : index
    %17 = vector.load %arg7[%c0_21, %c7, %c0_22] : memref<18x32x48xf32, #tpu.memory_space<vmem>>, vector<18x16x48xf32>
    %c0_23 = arith.constant 0 : index
    %c8_24 = arith.constant 8 : index
    %c0_25 = arith.constant 0 : index
    %18 = vector.load %arg7[%c0_23, %c8_24, %c0_25] : memref<18x32x48xf32, #tpu.memory_space<vmem>>, vector<18x16x48xf32>
    %c0_26 = arith.constant 0 : index
    %c9 = arith.constant 9 : index
    %c0_27 = arith.constant 0 : index
    %19 = vector.load %arg7[%c0_26, %c9, %c0_27] : memref<18x32x48xf32, #tpu.memory_space<vmem>>, vector<18x16x48xf32>
    %cst_28 = arith.constant 0.000000e+00 : f32
    %20 = vector.broadcast %cst_28 : f32 to vector<16x16x48xf32>
    %c0_29 = arith.constant 0 : index
    %c0_30 = arith.constant 0 : index
    %21 = vector.load %arg5[%c0_29, %c0_30] : memref<1x48xf32, #tpu.memory_space<vmem>>, vector<1x48xf32>
    %22 = vector.shape_cast %21 : vector<1x48xf32> to vector<1x1x48xf32>
    %23 = vector.broadcast %22 : vector<1x1x48xf32> to vector<16x16x48xf32>
    %24 = arith.addf %20, %23 : vector<16x16x48xf32>
    %25 = vector.extract_strided_slice %17 {offsets = [0, 0, 0], sizes = [16, 16, 48], strides = [1, 1, 1]} : vector<18x16x48xf32> to vector<16x16x48xf32>
    %c0_31 = arith.constant 0 : index
    %c0_32 = arith.constant 0 : index
    %c0_33 = arith.constant 0 : index
    %26 = vector.load %arg4[%c0_31, %c0_32, %c0_33] : memref<9x1x48xf32, #tpu.memory_space<vmem>>, vector<1x1x48xf32>
    %27 = vector.shape_cast %26 : vector<1x1x48xf32> to vector<1x48xf32>
    %28 = vector.shape_cast %27 : vector<1x48xf32> to vector<1x1x48xf32>
    %29 = vector.broadcast %28 : vector<1x1x48xf32> to vector<16x16x48xf32>
    %30 = arith.mulf %25, %29 : vector<16x16x48xf32>
    %31 = arith.addf %24, %30 : vector<16x16x48xf32>
    %32 = vector.extract_strided_slice %18 {offsets = [0, 0, 0], sizes = [16, 16, 48], strides = [1, 1, 1]} : vector<18x16x48xf32> to vector<16x16x48xf32>
    %c1_34 = arith.constant 1 : index
    %c0_35 = arith.constant 0 : index
    %c0_36 = arith.constant 0 : index
    %33 = vector.load %arg4[%c1_34, %c0_35, %c0_36] : memref<9x1x48xf32, #tpu.memory_space<vmem>>, vector<1x1x48xf32>
    %34 = vector.shape_cast %33 : vector<1x1x48xf32> to vector<1x48xf32>
    %35 = vector.shape_cast %34 : vector<1x48xf32> to vector<1x1x48xf32>
    %36 = vector.broadcast %35 : vector<1x1x48xf32> to vector<16x16x48xf32>
    %37 = arith.mulf %32, %36 : vector<16x16x48xf32>
    %38 = arith.addf %31, %37 : vector<16x16x48xf32>
    %39 = vector.extract_strided_slice %19 {offsets = [0, 0, 0], sizes = [16, 16, 48], strides = [1, 1, 1]} : vector<18x16x48xf32> to vector<16x16x48xf32>
    %c2 = arith.constant 2 : index
    %c0_37 = arith.constant 0 : index
    %c0_38 = arith.constant 0 : index
    %40 = vector.load %arg4[%c2, %c0_37, %c0_38] : memref<9x1x48xf32, #tpu.memory_space<vmem>>, vector<1x1x48xf32>
    %41 = vector.shape_cast %40 : vector<1x1x48xf32> to vector<1x48xf32>
    %42 = vector.shape_cast %41 : vector<1x48xf32> to vector<1x1x48xf32>
    %43 = vector.broadcast %42 : vector<1x1x48xf32> to vector<16x16x48xf32>
    %44 = arith.mulf %39, %43 : vector<16x16x48xf32>
    %45 = arith.addf %38, %44 : vector<16x16x48xf32>
    %46 = vector.extract_strided_slice %17 {offsets = [1, 0, 0], sizes = [16, 16, 48], strides = [1, 1, 1]} : vector<18x16x48xf32> to vector<16x16x48xf32>
    %c3 = arith.constant 3 : index
    %c0_39 = arith.constant 0 : index
    %c0_40 = arith.constant 0 : index
    %47 = vector.load %arg4[%c3, %c0_39, %c0_40] : memref<9x1x48xf32, #tpu.memory_space<vmem>>, vector<1x1x48xf32>
    %48 = vector.shape_cast %47 : vector<1x1x48xf32> to vector<1x48xf32>
    %49 = vector.shape_cast %48 : vector<1x48xf32> to vector<1x1x48xf32>
    %50 = vector.broadcast %49 : vector<1x1x48xf32> to vector<16x16x48xf32>
    %51 = arith.mulf %46, %50 : vector<16x16x48xf32>
    %52 = arith.addf %45, %51 : vector<16x16x48xf32>
    %53 = vector.extract_strided_slice %18 {offsets = [1, 0, 0], sizes = [16, 16, 48], strides = [1, 1, 1]} : vector<18x16x48xf32> to vector<16x16x48xf32>
    %c4 = arith.constant 4 : index
    %c0_41 = arith.constant 0 : index
    %c0_42 = arith.constant 0 : index
    %54 = vector.load %arg4[%c4, %c0_41, %c0_42] : memref<9x1x48xf32, #tpu.memory_space<vmem>>, vector<1x1x48xf32>
    %55 = vector.shape_cast %54 : vector<1x1x48xf32> to vector<1x48xf32>
    %56 = vector.shape_cast %55 : vector<1x48xf32> to vector<1x1x48xf32>
    %57 = vector.broadcast %56 : vector<1x1x48xf32> to vector<16x16x48xf32>
    %58 = arith.mulf %53, %57 : vector<16x16x48xf32>
    %59 = arith.addf %52, %58 : vector<16x16x48xf32>
    %60 = vector.extract_strided_slice %19 {offsets = [1, 0, 0], sizes = [16, 16, 48], strides = [1, 1, 1]} : vector<18x16x48xf32> to vector<16x16x48xf32>
    %c5 = arith.constant 5 : index
    %c0_43 = arith.constant 0 : index
    %c0_44 = arith.constant 0 : index
    %61 = vector.load %arg4[%c5, %c0_43, %c0_44] : memref<9x1x48xf32, #tpu.memory_space<vmem>>, vector<1x1x48xf32>
    %62 = vector.shape_cast %61 : vector<1x1x48xf32> to vector<1x48xf32>
    %63 = vector.shape_cast %62 : vector<1x48xf32> to vector<1x1x48xf32>
    %64 = vector.broadcast %63 : vector<1x1x48xf32> to vector<16x16x48xf32>
    %65 = arith.mulf %60, %64 : vector<16x16x48xf32>
    %66 = arith.addf %59, %65 : vector<16x16x48xf32>
    %67 = vector.extract_strided_slice %17 {offsets = [2, 0, 0], sizes = [16, 16, 48], strides = [1, 1, 1]} : vector<18x16x48xf32> to vector<16x16x48xf32>
    %c6 = arith.constant 6 : index
    %c0_45 = arith.constant 0 : index
    %c0_46 = arith.constant 0 : index
    %68 = vector.load %arg4[%c6, %c0_45, %c0_46] : memref<9x1x48xf32, #tpu.memory_space<vmem>>, vector<1x1x48xf32>
    %69 = vector.shape_cast %68 : vector<1x1x48xf32> to vector<1x48xf32>
    %70 = vector.shape_cast %69 : vector<1x48xf32> to vector<1x1x48xf32>
    %71 = vector.broadcast %70 : vector<1x1x48xf32> to vector<16x16x48xf32>
    %72 = arith.mulf %67, %71 : vector<16x16x48xf32>
    %73 = arith.addf %66, %72 : vector<16x16x48xf32>
    %74 = vector.extract_strided_slice %18 {offsets = [2, 0, 0], sizes = [16, 16, 48], strides = [1, 1, 1]} : vector<18x16x48xf32> to vector<16x16x48xf32>
    %c7_47 = arith.constant 7 : index
    %c0_48 = arith.constant 0 : index
    %c0_49 = arith.constant 0 : index
    %75 = vector.load %arg4[%c7_47, %c0_48, %c0_49] : memref<9x1x48xf32, #tpu.memory_space<vmem>>, vector<1x1x48xf32>
    %76 = vector.shape_cast %75 : vector<1x1x48xf32> to vector<1x48xf32>
    %77 = vector.shape_cast %76 : vector<1x48xf32> to vector<1x1x48xf32>
    %78 = vector.broadcast %77 : vector<1x1x48xf32> to vector<16x16x48xf32>
    %79 = arith.mulf %74, %78 : vector<16x16x48xf32>
    %80 = arith.addf %73, %79 : vector<16x16x48xf32>
    %81 = vector.extract_strided_slice %19 {offsets = [2, 0, 0], sizes = [16, 16, 48], strides = [1, 1, 1]} : vector<18x16x48xf32> to vector<16x16x48xf32>
    %c8_50 = arith.constant 8 : index
    %c0_51 = arith.constant 0 : index
    %c0_52 = arith.constant 0 : index
    %82 = vector.load %arg4[%c8_50, %c0_51, %c0_52] : memref<9x1x48xf32, #tpu.memory_space<vmem>>, vector<1x1x48xf32>
    %83 = vector.shape_cast %82 : vector<1x1x48xf32> to vector<1x48xf32>
    %84 = vector.shape_cast %83 : vector<1x48xf32> to vector<1x1x48xf32>
    %85 = vector.broadcast %84 : vector<1x1x48xf32> to vector<16x16x48xf32>
    %86 = arith.mulf %81, %85 : vector<16x16x48xf32>
    %87 = arith.addf %80, %86 : vector<16x16x48xf32>
    %88 = vector.shape_cast %87 : vector<16x16x48xf32> to vector<256x48xf32>
    %c0_53 = arith.constant 0 : index
    %c0_54 = arith.constant 0 : index
    %c0_55 = arith.constant 0 : index
    %89 = vector.load %arg6[%c0_53, %c0_54, %c0_55] : memref<1x256x48xf32, #tpu.memory_space<vmem>>, vector<1x256x48xf32>
    %90 = vector.shape_cast %89 : vector<1x256x48xf32> to vector<256x48xf32>
    %91 = vector.shape_cast %88 : vector<256x48xf32> to vector<1x256x48xf32>
    tpu.vector_store %arg6[%c0_53, %c0_54, %c0_55], %91 {strides = array<i32>} : memref<1x256x48xf32, #tpu.memory_space<vmem>>, vector<1x256x48xf32>,
    return
  }
  func.func @transform_0(%arg0: i32) -> (i32, i32, i32) {
    %c0_i32 = arith.constant 0 : i32
    %c0_i32_0 = arith.constant 0 : i32
    %c0_i32_1 = arith.constant 0 : i32
    return %arg0, %c0_i32, %c0_i32_0 : i32, i32, i32
  }
  func.func @transform_1(%arg0: i32) -> (i32, i32) {
    %c0_i32 = arith.constant 0 : i32
    %c0_i32_0 = arith.constant 0 : i32
    %c0_i32_1 = arith.constant 0 : i32
    return %c0_i32, %c0_i32_0 : i32, i32
  }
  func.func @transform_2(%arg0: i32) -> (i32, i32) {
    %c0_i32 = arith.constant 0 : i32
    %c0_i32_0 = arith.constant 0 : i32
    %c0_i32_1 = arith.constant 0 : i32
    return %c0_i32, %c0_i32_0 : i32, i32
  }
  func.func @transform_3(%arg0: i32) -> (i32, i32, i32) {
    %c0_i32 = arith.constant 0 : i32
    %c0_i32_0 = arith.constant 0 : i32
    %c0_i32_1 = arith.constant 0 : i32
    %c0_i32_2 = arith.constant 0 : i32
    return %c0_i32, %c0_i32_0, %c0_i32_1 : i32, i32, i32
  }
  func.func @transform_4(%arg0: i32) -> (i32, i32) {
    %c0_i32 = arith.constant 0 : i32
    %c0_i32_0 = arith.constant 0 : i32
    %c0_i32_1 = arith.constant 0 : i32
    return %c0_i32, %c0_i32_0 : i32, i32
  }
  func.func @transform_5(%arg0: i32) -> (i32, i32, i32) {
    %c0_i32 = arith.constant 0 : i32
    %c0_i32_0 = arith.constant 0 : i32
    %c0_i32_1 = arith.constant 0 : i32
    return %arg0, %c0_i32, %c0_i32_0 : i32, i32, i32
  }
}

module attributes {stable_mosaic.version = 11 : i64} {
  func.func @_attn_proj_kernel(%arg0: i32, %arg1: memref<1x256x48xf32, #tpu.memory_space<vmem>>, %arg2: memref<1x16xf32, #tpu.memory_space<vmem>>, %arg3: memref<16x16xf32, #tpu.memory_space<vmem>>, %arg4: memref<16x16xf32, #tpu.memory_space<vmem>>, %arg5: memref<16x1xf32, #tpu.memory_space<vmem>>, %arg6: memref<1x16x256xf32, #tpu.memory_space<vmem>>) attributes {dimension_semantics = [#tpu.dimension_semantics<parallel>], iteration_bounds = array<i64: 2>, scalar_prefetch = 0 : i64, scratch_operands = 0 : i64, tpu.core_type = #tpu.core_type<tc>, window_params = [{transform_indices = @transform_0, window_bounds = array<i64: 1, 256, 48>}, {pipeline_mode = #tpu.pipeline_mode<synchronous>, transform_indices = @transform_1, window_bounds = array<i64: 1, 16>}, {pipeline_mode = #tpu.pipeline_mode<synchronous>, transform_indices = @transform_2, window_bounds = array<i64: 16, 16>}, {pipeline_mode = #tpu.pipeline_mode<synchronous>, transform_indices = @transform_3, window_bounds = array<i64: 16, 16>}, {pipeline_mode = #tpu.pipeline_mode<synchronous>, transform_indices = @transform_4, window_bounds = array<i64: 16, 1>}, {transform_indices = @transform_5, window_bounds = array<i64: 1, 16, 256>}]} {
    %c0 = arith.constant 0 : index
    %c0_0 = arith.constant 0 : index
    %c0_1 = arith.constant 0 : index
    %0 = vector.load %arg1[%c0, %c0_0, %c0_1] : memref<1x256x48xf32, #tpu.memory_space<vmem>>, vector<1x256x48xf32>
    %1 = vector.shape_cast %0 : vector<1x256x48xf32> to vector<256x48xf32>
    %2 = vector.extract_strided_slice %1 {offsets = [0, 0], sizes = [256, 16], strides = [1, 1]} : vector<256x48xf32> to vector<256x16xf32>
    %3 = vector.extract_strided_slice %1 {offsets = [0, 16], sizes = [256, 16], strides = [1, 1]} : vector<256x48xf32> to vector<256x16xf32>
    %4 = vector.extract_strided_slice %1 {offsets = [0, 32], sizes = [256, 16], strides = [1, 1]} : vector<256x48xf32> to vector<256x16xf32>
    %5 = arith.mulf %2, %2 : vector<256x16xf32>
    %cst = arith.constant dense<0.000000e+00> : vector<16xf32>
    %6 = vector.multi_reduction <add>, %5, %cst [0] : vector<256x16xf32> to vector<16xf32>
    %7 = vector.shape_cast %6 : vector<16xf32> to vector<1x16xf32>
    %cst_2 = arith.constant 1.000000e-24 : f32
    %8 = vector.broadcast %cst_2 : f32 to vector<1x16xf32>
    %9 = arith.maximumf %7, %8 : vector<1x16xf32>
    %10 = math.rsqrt %9 : vector<1x16xf32>
    %11 = arith.mulf %3, %3 : vector<256x16xf32>
    %cst_3 = arith.constant dense<0.000000e+00> : vector<16xf32>
    %12 = vector.multi_reduction <add>, %11, %cst_3 [0] : vector<256x16xf32> to vector<16xf32>
    %13 = vector.shape_cast %12 : vector<16xf32> to vector<1x16xf32>
    %cst_4 = arith.constant 1.000000e-24 : f32
    %14 = vector.broadcast %cst_4 : f32 to vector<1x16xf32>
    %15 = arith.maximumf %13, %14 : vector<1x16xf32>
    %16 = math.rsqrt %15 : vector<1x16xf32>
    %c0_5 = arith.constant 0 : index
    %c0_6 = arith.constant 0 : index
    %17 = vector.load %arg2[%c0_5, %c0_6] : memref<1x16xf32, #tpu.memory_space<vmem>>, vector<1x16xf32>
    %18 = arith.mulf %10, %17 : vector<1x16xf32>
    %19 = vector.broadcast %18 : vector<1x16xf32> to vector<256x16xf32>
    %20 = arith.mulf %2, %19 : vector<256x16xf32>
    %21 = vector.broadcast %16 : vector<1x16xf32> to vector<256x16xf32>
    %22 = arith.mulf %3, %21 : vector<256x16xf32>
    %cst_7 = arith.constant dense<0.000000e+00> : vector<16x16xf32>
    %23 = tpu.matmul %20, %22, %cst_7 {dimension_numbers = #tpu.dot_dimension_numbers<[0], [0], [1], [1], [0, 1, 1, 1], [], []>} : vector<256x16xf32>, vector<256x16xf32>, vector<16x16xf32> -> vector<16x16xf32>
    %c0_8 = arith.constant 0 : index
    %c0_9 = arith.constant 0 : index
    %24 = vector.load %arg3[%c0_8, %c0_9] : memref<16x16xf32, #tpu.memory_space<vmem>>, vector<16x16xf32>
    %25 = arith.addf %23, %24 : vector<16x16xf32>
    %cst_10 = arith.constant dense<0xFF800000> : vector<16xf32>
    %26 = vector.multi_reduction <maximumf>, %25, %cst_10 [1] : vector<16x16xf32> to vector<16xf32>
    %27 = vector.shape_cast %26 : vector<16xf32> to vector<16x1xf32>
    %28 = vector.broadcast %27 : vector<16x1xf32> to vector<16x16xf32>
    %29 = arith.subf %25, %28 : vector<16x16xf32>
    %30 = math.exp %29 : vector<16x16xf32>
    %cst_11 = arith.constant dense<0.000000e+00> : vector<16xf32>
    %31 = vector.multi_reduction <add>, %30, %cst_11 [1] : vector<16x16xf32> to vector<16xf32>
    %32 = vector.shape_cast %31 : vector<16xf32> to vector<16x1xf32>
    %33 = vector.broadcast %32 : vector<16x1xf32> to vector<16x16xf32>
    %34 = arith.divf %30, %33 : vector<16x16xf32>
    %cst_12 = arith.constant dense<0.000000e+00> : vector<16x256xf32>
    %35 = tpu.matmul %34, %4, %cst_12 {dimension_numbers = #tpu.dot_dimension_numbers<[1], [1], [0], [0], [0, 0, 1, 0], [], []>} : vector<16x16xf32>, vector<256x16xf32>, vector<16x256xf32> -> vector<16x256xf32>
    %c0_13 = arith.constant 0 : index
    %c0_14 = arith.constant 0 : index
    %36 = vector.load %arg4[%c0_13, %c0_14] : memref<16x16xf32, #tpu.memory_space<vmem>>, vector<16x16xf32>
    %cst_15 = arith.constant dense<0.000000e+00> : vector<16x256xf32>
    %37 = tpu.matmul %36, %35, %cst_15 {dimension_numbers = #tpu.dot_dimension_numbers<[0], [0], [1], [1], [0, 1, 1, 1], [], []>} : vector<16x16xf32>, vector<16x256xf32>, vector<16x256xf32> -> vector<16x256xf32>
    %c0_16 = arith.constant 0 : index
    %c0_17 = arith.constant 0 : index
    %38 = vector.load %arg5[%c0_16, %c0_17] : memref<16x1xf32, #tpu.memory_space<vmem>>, vector<16x1xf32>
    %39 = vector.broadcast %38 : vector<16x1xf32> to vector<16x256xf32>
    %40 = arith.addf %37, %39 : vector<16x256xf32>
    %c0_18 = arith.constant 0 : index
    %c0_19 = arith.constant 0 : index
    %c0_20 = arith.constant 0 : index
    %41 = vector.load %arg6[%c0_18, %c0_19, %c0_20] : memref<1x16x256xf32, #tpu.memory_space<vmem>>, vector<1x16x256xf32>
    %42 = vector.shape_cast %41 : vector<1x16x256xf32> to vector<16x256xf32>
    %43 = vector.shape_cast %40 : vector<16x256xf32> to vector<1x16x256xf32>
    tpu.vector_store %arg6[%c0_18, %c0_19, %c0_20], %43 {strides = array<i32>} : memref<1x16x256xf32, #tpu.memory_space<vmem>>, vector<1x16x256xf32>,
    return
  }
  func.func @transform_0(%arg0: i32) -> (i32, i32, i32) {
    %c0_i32 = arith.constant 0 : i32
    %c0_i32_0 = arith.constant 0 : i32
    %c0_i32_1 = arith.constant 0 : i32
    return %arg0, %c0_i32, %c0_i32_0 : i32, i32, i32
  }
  func.func @transform_1(%arg0: i32) -> (i32, i32) {
    %c0_i32 = arith.constant 0 : i32
    %c0_i32_0 = arith.constant 0 : i32
    %c0_i32_1 = arith.constant 0 : i32
    return %c0_i32, %c0_i32_0 : i32, i32
  }
  func.func @transform_2(%arg0: i32) -> (i32, i32) {
    %c0_i32 = arith.constant 0 : i32
    %c0_i32_0 = arith.constant 0 : i32
    %c0_i32_1 = arith.constant 0 : i32
    return %c0_i32, %c0_i32_0 : i32, i32
  }
  func.func @transform_3(%arg0: i32) -> (i32, i32) {
    %c0_i32 = arith.constant 0 : i32
    %c0_i32_0 = arith.constant 0 : i32
    %c0_i32_1 = arith.constant 0 : i32
    return %c0_i32, %c0_i32_0 : i32, i32
  }
  func.func @transform_4(%arg0: i32) -> (i32, i32) {
    %c0_i32 = arith.constant 0 : i32
    %c0_i32_0 = arith.constant 0 : i32
    %c0_i32_1 = arith.constant 0 : i32
    return %c0_i32, %c0_i32_0 : i32, i32
  }
  func.func @transform_5(%arg0: i32) -> (i32, i32, i32) {
    %c0_i32 = arith.constant 0 : i32
    %c0_i32_0 = arith.constant 0 : i32
    %c0_i32_1 = arith.constant 0 : i32
    return %arg0, %c0_i32, %c0_i32_0 : i32, i32, i32
  }
}

</mosaic_0001>

<bundles_post_ra>
// kernel: attention_forward.2
= control target key start
LH: loop header
LB: loop body
LE: loop exit
PB: predicated region body
PF: predicated region fallthrough
CT: control target
= control target key end

     0   :  { %s1764_s18 = smov 0   ;;  %s2780_s0 = inlined_call_operand.vmem [shape: f32[2,16,256], index: 0, kind: input, shape index: {}]   ;;  %s2781_s1 = inlined_call_operand.vmem [shape: f32[16,48], index: 1, kind: input, shape index: {}]   ;;  %s2782_s2 = inlined_call_operand.vmem [shape: f32[1,48], index: 2, kind: input, shape index: {}]   ;;  %s2783_s3 = inlined_call_operand.vmem [shape: f32[9,1,48], index: 3, kind: input, shape index: {}]   ;;  %s2784_s4 = inlined_call_operand.vmem [shape: f32[1,48], index: 4, kind: input, shape index: {}]   ;;  %s2785_s5 = inlined_call_operand.vmem [shape: f32[2,256,48], index: 5, kind: output, shape index: {}]  }
   0x1 LB: > { %s1549_s19 = sadd.s32 4294967295, %s1731_s18   ;;  %p1553_p0 = scmp.ge.s32.totalorder %s1731_s18, 1  ;;  %s1731_s18 = sphi %s1764_s18, %s15_s18  }
   0x2   : > { %p187_p1 = scmp.lt.s32.totalorder %s1731_s18, 3 }
   0x4   : > { %p188_p2 = pnand %p1553_p0, %p187_p1 }
   0x6   : > { %191 = sbr.rel (%p188_p2) target bundleno = 531 (0x213), region = 40 }
   0xd   : > { %p215_p3 = scmp.lt.s32.totalorder %s1549_s19, 1  ;;  %v229_v0 = vld [vmem:[%s2781_s1] sm:$0xff]  ;;  %v230_v1 = vld [vmem:[%s2781_s1 + $0x8] sm:$0xff]  ;;  %vm302_vm0 = vcmask 130048   ;;  %vm624_vm1 = vcmask 392192   ;;  %v1733_v39 = vmov 0.0  }
   0xe   : > { %v1699_v4 = vpack.c.bf16 %v230_v1, %v229_v0  ;;  %651 = vst.msk [vmem:[#allocation2 + $0x38] sm:$0xff] %vm624_vm1, %v1733_v39  ;;  %625 = vst.msk [vmem:[#allocation2] sm:$0xff] %vm624_vm1, %v1733_v39  ;;  %v1859_v40 = vld [vmem:[%s2782_s2] ss:$0 sm:$0xff]  ;;  %v1875_v53 = vld [vmem:[%s2783_s3 + $0x1] ss:$0 sm:$0xff] }
   0xf   : > { %s2825_s19 = smov (!%p215_p3, %s1549_s19), 1  ;;  %626 = vst.msk [vmem:[#allocation2 + $0x8] sm:$0xff] %vm624_vm1, %v1733_v39  ;;  %627 = vst.msk [vmem:[#allocation2 + $0x10] sm:$0xff] %vm624_vm1, %v1733_v39  ;;  %v1864_v42 = vld [vmem:[%s2783_s3] ss:$0 sm:$0xff] }
  0x10   : > { %s1611_s20 = sshll.u32 %s2825_s19, 5  ;;  %1700 = vmatprep.subr.bf16.mxu0 %v1699_v4  ;;  %1703 = vmatprep.subr.bf16.mxu1 %v1699_v4  ;;  %628 = vst.msk [vmem:[#allocation2 + $0x18] sm:$0xff] %vm624_vm1, %v1733_v39  ;;  %630 = vst.msk [vmem:[#allocation2 + $0x220] sm:$0xff] %vm624_vm1, %v1733_v39  ;;  %v1880_v55 = vld [vmem:[%s2784_s4] ss:$0 sm:$0xff]  ;;  %s1612_s27 = sshll.u32 %s2825_s19, 8 }
  0x11   : > { %s219_s23 = scalar_lea.vmem %s2780_s0, %s1611_s20  ;;  %1702 = vmatpush3.bf16.msra.mxu0 %v1699_v4  ;;  %1704 = vmatpush3.bf16.msra.mxu1 %v1699_v4  ;;  %631 = vst.msk [vmem:[#allocation2 + $0x228] sm:$0xff] %vm624_vm1, %v1733_v39  ;;  %632 = vst.msk [vmem:[#allocation2 + $0x230] sm:$0xff] %vm624_vm1, %v1733_v39  ;;  %v1891_v60 = vld [vmem:[%s2783_s3 + $0x2] ss:$0 sm:$0xff]  ;;  %s2051_s29 = scalar_lea.vmem %s2785_s5, %s1612_s27 }
  0x12   : > { %v226_v2 = vld [vmem:[%s219_s23 + $0x8] sm:$0xff]  ;;  %v225_v3 = vld [vmem:[%s219_s23] sm:$0xff]  ;;  %v228_v5 = vld [vmem:[%s219_s23 + $0x18] sm:$0xff]  ;;  %633 = vst.msk [vmem:[#allocation2 + $0x238] sm:$0xff] %vm624_vm1, %v1733_v39 }
  0x13   : > { %270 = vxpose.xlu1.b32.start [1/2] (short) %v226_v2, 128  ;;  %238 = vxpose.xlu0.b32.start [1/2] (short) %v225_v3, 128  ;;  %v227_v6 = vld [vmem:[%s219_s23 + $0x10] sm:$0xff]  ;;  %635 = vst.msk [vmem:[#allocation2 + $0x20] sm:$0xff] %vm624_vm1, %v1733_v39  ;;  %636 = vst.msk [vmem:[#allocation2 + $0x40] sm:$0xff] %vm624_vm1, %v1733_v39 }
  0x14   : > { %637 = vst.msk [vmem:[#allocation2 + $0x60] sm:$0xff] %vm624_vm1, %v1733_v39  ;;  %638 = vst.msk [vmem:[#allocation2 + $0x80] sm:$0xff] %vm624_vm1, %v1733_v39 }
  0x15   : > { %639 = vst.msk [vmem:[#allocation2 + $0xa0] sm:$0xff] %vm624_vm1, %v1733_v39  ;;  %640 = vst.msk [vmem:[#allocation2 + $0xc0] sm:$0xff] %vm624_vm1, %v1733_v39 }
  0x16   : > { %641 = vst.msk [vmem:[#allocation2 + $0xe0] sm:$0xff] %vm624_vm1, %v1733_v39  ;;  %642 = vst.msk [vmem:[#allocation2 + $0x100] sm:$0xff] %vm624_vm1, %v1733_v39  ;;  %v699_v41 = vld [vmem:[#allocation2 + $0x7] sm:$0xff]  ;;  %v700_v50 = vld [vmem:[#allocation2 + $0xf] sm:$0xff] }
  0x17   : > { %271 = vxpose.xlu1.b32.end [2/2] (short) %v228_v5, 128  ;;  %239 = vxpose.xlu0.b32.end [2/2] (short) %v227_v6, 128  ;;  %643 = vst.msk [vmem:[#allocation2 + $0x120] sm:$0xff] %vm624_vm1, %v1733_v39  ;;  %644 = vst.msk [vmem:[#allocation2 + $0x140] sm:$0xff] %vm624_vm1, %v1733_v39  ;;  %v822_v51 = vmul.f32 %v1864_v42, %v699_v41  ;;  %v735_v54 = vld [vmem:[#allocation2 + $0x8] sm:$0xff]  ;;  %v823_v56 = vmul.f32 %v1864_v42, %v700_v50  ;;  %v736_v57 = vld [vmem:[#allocation2 + $0x10] sm:$0xff] }
  0x18   : > { %645 = vst.msk [vmem:[#allocation2 + $0x160] sm:$0xff] %vm624_vm1, %v1733_v39  ;;  %646 = vst.msk [vmem:[#allocation2 + $0x180] sm:$0xff] %vm624_vm1, %v1733_v39  ;;  %v894_v59 = vmul.f32 %v1875_v53, %v735_v54  ;;  %v771_v61 = vld [vmem:[#allocation2 + $0x9] sm:$0xff]  ;;  %v895_v1 = vmul.f32 %v1875_v53, %v736_v57  ;;  %v772_v6 = vld [vmem:[#allocation2 + $0x11] sm:$0xff] }
  0x19   : > { %647 = vst.msk [vmem:[#allocation2 + $0x1a0] sm:$0xff] %vm624_vm1, %v1733_v39  ;;  %648 = vst.msk [vmem:[#allocation2 + $0x1c0] sm:$0xff] %vm624_vm1, %v1733_v39  ;;  %v854_v58 = vadd.f32 %v1880_v55, %v822_v51  ;;  %v855_v0 = vadd.f32 %v1880_v55, %v823_v56  ;;  %v1951_v56 = vld [vmem:[%s2783_s3 + $0x7] ss:$0 sm:$0xff]  ;;  %v1956_v57 = vld [vmem:[%s2783_s3 + $0x8] ss:$0 sm:$0xff] }
  0x1a   : > { %649 = vst.msk [vmem:[#allocation2 + $0x1e0] sm:$0xff] %vm624_vm1, %v1733_v39  ;;  %650 = vst.msk [vmem:[#allocation2 + $0x200] sm:$0xff] %vm624_vm1, %v1733_v39 }
  0x1b   : > { %652 = vst.msk [vmem:[#allocation2 + $0x58] sm:$0xff] %vm624_vm1, %v1733_v39  ;;  %653 = vst.msk [vmem:[#allocation2 + $0x78] sm:$0xff] %vm624_vm1, %v1733_v39 }
  0x1c   : > { %654 = vst.msk [vmem:[#allocation2 + $0x98] sm:$0xff] %vm624_vm1, %v1733_v39  ;;  %655 = vst.msk [vmem:[#allocation2 + $0xb8] sm:$0xff] %vm624_vm1, %v1733_v39 }
  0x1d   : > { %656 = vst.msk [vmem:[#allocation2 + $0xd8] sm:$0xff] %vm624_vm1, %v1733_v39  ;;  %657 = vst.msk [vmem:[#allocation2 + $0xf8] sm:$0xff] %vm624_vm1, %v1733_v39 }
  0x1e   : > { %658 = vst.msk [vmem:[#allocation2 + $0x118] sm:$0xff] %vm624_vm1, %v1733_v39  ;;  %659 = vst.msk [vmem:[#allocation2 + $0x138] sm:$0xff] %vm624_vm1, %v1733_v39 }
  0x1f   : > { %660 = vst.msk [vmem:[#allocation2 + $0x158] sm:$0xff] %vm624_vm1, %v1733_v39  ;;  %661 = vst.msk [vmem:[#allocation2 + $0x178] sm:$0xff] %vm624_vm1, %v1733_v39 }
  0x20   : > { %662 = vst.msk [vmem:[#allocation2 + $0x198] sm:$0xff] %vm624_vm1, %v1733_v39  ;;  %663 = vst.msk [vmem:[#allocation2 + $0x1b8] sm:$0xff] %vm624_vm1, %v1733_v39 }
  0x21   : > { %664 = vst.msk [vmem:[#allocation2 + $0x1d8] sm:$0xff] %vm624_vm1, %v1733_v39  ;;  %665 = vst.msk [vmem:[#allocation2 + $0x1f8] sm:$0xff] %vm624_vm1, %v1733_v39 }
  0x22   : > { %666 = vst.msk [vmem:[#allocation2 + $0x218] sm:$0xff] %vm624_vm1, %v1733_v39 }
  0x93   : > { %v286_v7 = vpop.trf.xlu1  ;;  %v254_v8 = vpop.trf.xlu0 }
  0x94   : > { %1651 = vmatprep.mubr.msk.f32.mxu0 %vm302_vm0, %v254_v8  ;;  %1675 = vmatprep.mubr.msk.f32.mxu1 %vm302_vm0, %v286_v7  ;;  %v926_v7 = vadd.f32 %v894_v59, %v854_v58  ;;  %v966_v8 = vmul.f32 %v1891_v60, %v771_v61 }
  0x97   : > { %v287_v9 = vpop.trf.xlu1  ;;  %v255_v10 = vpop.trf.xlu0 }
  0x98   : > { %1652 = vmatmul.mubr.msk.f32.vlgmr.msra.gmra.mrb[0].mxu0 %vm302_vm0, %v255_v10  ;;  %1676 = vmatmul.mubr.msk.f32.vlgmr.msra.gmra.mrb[0].mxu1 %vm302_vm0, %v287_v9 }
  0x9b   : > { %v288_v11 = vpop.trf.xlu1  ;;  %v256_v12 = vpop.trf.xlu0 }
  0x9c   : > { %1654 = vmatprep.mubr.msk.f32.mxu0 %vm302_vm0, %v256_v12  ;;  %1678 = vmatprep.mubr.msk.f32.mxu1 %vm302_vm0, %v288_v11  ;;  %v1903_v12 = vld [vmem:[%s2783_s3 + $0x3] ss:$0 sm:$0xff] }
  0x9f   : > { %v289_v13 = vpop.trf.xlu1  ;;  %v257_v14 = vpop.trf.xlu0 }
  0xa0   : > { %1655 = vmatmul.mubr.msk.f32.gmra.mrb[2].mxu0 %vm302_vm0, %v257_v14  ;;  %1679 = vmatmul.mubr.msk.f32.gmra.mrb[2].mxu1 %vm302_vm0, %v289_v13  ;;  %v927_v13 = vadd.f32 %v895_v1, %v855_v0  ;;  %v967_v14 = vmul.f32 %v1891_v60, %v772_v6 }
  0xa3   : > { %v290_v15 = vpop.trf.xlu1  ;;  %v258_v16 = vpop.trf.xlu0 }
  0xa4   : > { %1657 = vmatprep.mubr.msk.f32.mxu0 %vm302_vm0, %v258_v16  ;;  %1681 = vmatprep.mubr.msk.f32.mxu1 %vm302_vm0, %v290_v15 }
  0xa7   : > { %v291_v17 = vpop.trf.xlu1  ;;  %v259_v18 = vpop.trf.xlu0 }
  0xa8   : > { %1658 = vmatmul.mubr.msk.f32.gmra.mrb[4].mxu0 %vm302_vm0, %v259_v18  ;;  %1682 = vmatmul.mubr.msk.f32.gmra.mrb[4].mxu1 %vm302_vm0, %v291_v17  ;;  %v998_v17 = vadd.f32 %v966_v8, %v926_v7 }
  0xab   : > { %v292_v19 = vpop.trf.xlu1  ;;  %v260_v20 = vpop.trf.xlu0 }
  0xac   : > { %1660 = vmatprep.mubr.msk.f32.mxu0 %vm302_vm0, %v260_v20  ;;  %1684 = vmatprep.mubr.msk.f32.mxu1 %vm302_vm0, %v292_v19  ;;  %v1915_v19 = vld [vmem:[%s2783_s3 + $0x4] ss:$0 sm:$0xff] }
  0xaf   : > { %v293_v21 = vpop.trf.xlu1  ;;  %v261_v22 = vpop.trf.xlu0 }
  0xb0   : > { %1661 = vmatmul.mubr.msk.f32.gmra.mrb[6].mxu0 %vm302_vm0, %v261_v22  ;;  %1685 = vmatmul.mubr.msk.f32.gmra.mrb[6].mxu1 %vm302_vm0, %v293_v21 }
  0xb3   : > { %v294_v23 = vpop.trf.xlu1  ;;  %v262_v24 = vpop.trf.xlu0 }
  0xb4   : > { %1663 = vmatprep.mubr.msk.f32.mxu0 %vm302_vm0, %v262_v24  ;;  %1687 = vmatprep.mubr.msk.f32.mxu1 %vm302_vm0, %v294_v23 }
  0xb7   : > { %v295_v25 = vpop.trf.xlu1  ;;  %v263_v26 = vpop.trf.xlu0 }
  0xb8   : > { %1664 = vmatmul.mubr.msk.f32.gmra.mrb[8].mxu0 %vm302_vm0, %v263_v26  ;;  %1688 = vmatmul.mubr.msk.f32.gmra.mrb[8].mxu1 %vm302_vm0, %v295_v25  ;;  %v999_v26 = vadd.f32 %v967_v14, %v927_v13 }
  0xbb   : > { %v296_v27 = vpop.trf.xlu1  ;;  %v264_v28 = vpop.trf.xlu0 }
  0xbc   : > { %1666 = vmatprep.mubr.msk.f32.mxu0 %vm302_vm0, %v264_v28  ;;  %1690 = vmatprep.mubr.msk.f32.mxu1 %vm302_vm0, %v296_v27 }
  0xbf   : > { %v297_v29 = vpop.trf.xlu1  ;;  %v265_v30 = vpop.trf.xlu0 }
  0xc0   : > { %1667 = vmatmul.mubr.msk.f32.gmra.mrb[10].mxu0 %vm302_vm0, %v265_v30  ;;  %1691 = vmatmul.mubr.msk.f32.gmra.mrb[10].mxu1 %vm302_vm0, %v297_v29 }
  0xc3   : > { %v298_v31 = vpop.trf.xlu1  ;;  %v266_v32 = vpop.trf.xlu0 }
  0xc4   : > { %1669 = vmatprep.mubr.msk.f32.mxu0 %vm302_vm0, %v266_v32  ;;  %1693 = vmatprep.mubr.msk.f32.mxu1 %vm302_vm0, %v298_v31 }
  0xc7   : > { %v299_v33 = vpop.trf.xlu1  ;;  %v267_v34 = vpop.trf.xlu0 }
  0xc8   : > { %1670 = vmatmul.mubr.msk.f32.gmra.mrb[12].mxu0 %vm302_vm0, %v267_v34  ;;  %1694 = vmatmul.mubr.msk.f32.gmra.mrb[12].mxu1 %vm302_vm0, %v299_v33  ;;  %v1933_v34 = vld [vmem:[%s2783_s3 + $0x5] ss:$0 sm:$0xff] }
  0xcb   : > { %v300_v35 = vpop.trf.xlu1  ;;  %v268_v36 = vpop.trf.xlu0 }
  0xcc   : > { %1672 = vmatprep.mubr.msk.f32.mxu0 %vm302_vm0, %v268_v36  ;;  %1696 = vmatprep.mubr.msk.f32.mxu1 %vm302_vm0, %v300_v35 }
  0xcf   : > { %v301_v37 = vpop.trf.xlu1  ;;  %v269_v38 = vpop.trf.xlu0 }
  0xd0   : > { %1673 = vmatmul.mubr.msk.f32.gmra.mrb[14].mxu0 %vm302_vm0, %v269_v38  ;;  %1697 = vmatmul.mubr.msk.f32.gmra.mrb[14].mxu1 %vm302_vm0, %v301_v37 }
 0x16b   : > { %v1653_v43 = vpop.f32.mrb[0].mxu0  ;;  %v1677_v44 = vpop.f32.mrb[0].mxu1 }
 0x16c   : > { %v471_v45 = vadd.f32 %v1653_v43, %v1859_v40  ;;  %v465_v46 = vpop.f32.mrb[1].mxu0  ;;  %v551_v47 = vadd.f32 %v1677_v44, %v1859_v40  ;;  %v545_v48 = vpop.f32.mrb[1].mxu1 }
 0x16d   : > { %v466_v49 = vadd.f32 %v1859_v40, %v465_v46  ;;  %v546_v52 = vadd.f32 %v1859_v40, %v545_v48 }
 0x16e   : > { %668 = vst.msk [vmem:[#allocation2 + $0x30] sm:$0xff] %vm624_vm1, %v471_v45  ;;  %684 = vst.msk [vmem:[#allocation2 + $0x130] sm:$0xff] %vm624_vm1, %v551_v47 }
 0x16f   : > { %667 = vst.msk [vmem:[#allocation2 + $0x28] sm:$0xff] %vm624_vm1, %v466_v49  ;;  %683 = vst.msk [vmem:[#allocation2 + $0x128] sm:$0xff] %vm624_vm1, %v546_v52 }
 0x173   : > { %v1656_v62 = vpop.f32.mrb[2].mxu0  ;;  %v1680_v63 = vpop.f32.mrb[2].mxu1 }
 0x174   : > { %v481_v2 = vadd.f32 %v1656_v62, %v1859_v40  ;;  %v561_v3 = vadd.f32 %v1680_v63, %v1859_v40  ;;  %v475_v4 = vpop.f32.mrb[3].mxu0  ;;  %v555_v5 = vpop.f32.mrb[3].mxu1 }
 0x175   : > { %v476_v9 = vadd.f32 %v1859_v40, %v475_v4  ;;  %v556_v10 = vadd.f32 %v1859_v40, %v555_v5  ;;  %v738_v23 = vld [vmem:[#allocation2 + $0x30] sm:$0xff] }
 0x176   : > { %v701_v11 = vld [vmem:[#allocation2 + $0x27] sm:$0xff]  ;;  %670 = vst.msk [vmem:[#allocation2 + $0x50] sm:$0xff] %vm624_vm1, %v481_v2  ;;  %686 = vst.msk [vmem:[#allocation2 + $0x150] sm:$0xff] %vm624_vm1, %v561_v3  ;;  %v702_v15 = vld [vmem:[#allocation2 + $0x2f] sm:$0xff]  ;;  %v897_v37 = vmul.f32 %v1875_v53, %v738_v23  ;;  %v1111_v46 = vmul.f32 %v1915_v19, %v738_v23 }
 0x177   : > { %669 = vst.msk [vmem:[#allocation2 + $0x48] sm:$0xff] %vm624_vm1, %v476_v9  ;;  %685 = vst.msk [vmem:[#allocation2 + $0x148] sm:$0xff] %vm624_vm1, %v556_v10  ;;  %v824_v16 = vmul.f32 %v1864_v42, %v701_v11  ;;  %v1038_v18 = vmul.f32 %v1903_v12, %v701_v11  ;;  %v1917_v20 = vld [vmem:[#allocation2 + $0x127] sm:$0xff]  ;;  %v825_v25 = vmul.f32 %v1864_v42, %v702_v15  ;;  %v718_v28 = vld [vmem:[#allocation2 + $0x12f] sm:$0xff] }
 0x178   : > { %v737_v24 = vld [vmem:[#allocation2 + $0x28] sm:$0xff]  ;;  %v1039_v27 = vmul.f32 %v1903_v12, %v702_v15  ;;  %v774_v31 = vld [vmem:[#allocation2 + $0x31] sm:$0xff]  ;;  %v840_v36 = vmul.f32 %v1864_v42, %v1917_v20  ;;  %v841_v44 = vmul.f32 %v1864_v42, %v718_v28  ;;  %v1985_v10 = vld [vmem:[%s2783_s3 + $0x6] ss:$0 sm:$0xff] }
 0x179   : > { %v856_v32 = vadd.f32 %v1880_v55, %v824_v16  ;;  %v1070_v33 = vadd.f32 %v1038_v18, %v998_v17  ;;  %v773_v35 = vld [vmem:[#allocation2 + $0x29] sm:$0xff]  ;;  %v896_v38 = vmul.f32 %v1875_v53, %v737_v24  ;;  %v1110_v39 = vmul.f32 %v1915_v19, %v737_v24  ;;  %v790_v49 = vld [vmem:[#allocation2 + $0x131] sm:$0xff] }
 0x17a   : > { %v754_v41 = vld [vmem:[#allocation2 + $0x130] sm:$0xff]  ;;  %v753_v43 = vld [vmem:[#allocation2 + $0x128] sm:$0xff]  ;;  %v1942_v45 = vmul.f32 %v1891_v60, %v774_v31  ;;  %v857_v47 = vadd.f32 %v1880_v55, %v825_v25  ;;  %v1071_v48 = vadd.f32 %v1039_v27, %v999_v26  ;;  %v1183_v50 = vmul.f32 %v1933_v34, %v774_v31 }
 0x17b   : > { %v1919_v21 = vpop.f32.mrb[4].mxu0  ;;  %v1921_v22 = vpop.f32.mrb[4].mxu1  ;;  %v928_v51 = vadd.f32 %v896_v38, %v856_v32  ;;  %v968_v52 = vmul.f32 %v1891_v60, %v773_v35  ;;  %v1142_v54 = vadd.f32 %v1110_v39, %v1070_v33  ;;  %v1182_v58 = vmul.f32 %v1933_v34, %v773_v35  ;;  %v789_v61 = vld [vmem:[#allocation2 + $0x129] sm:$0xff] }
 0x17c   : > { %v1925_v29 = vpop.f32.mrb[5].mxu0  ;;  %v1927_v30 = vpop.f32.mrb[5].mxu1  ;;  %v913_v59 = vmul.f32 %v1875_v53, %v754_v41  ;;  %v872_v62 = vadd.f32 %v1880_v55, %v840_v36  ;;  %v912_v63 = vmul.f32 %v1875_v53, %v753_v43  ;;  %v1963_v0 = vmul.f32 %v1891_v60, %v790_v49 }
 0x17d   : > { %v1966_v1 = vmul.f32 %v1915_v19, %v754_v41  ;;  %v1969_v2 = vmul.f32 %v1933_v34, %v790_v49  ;;  %v873_v3 = vadd.f32 %v1880_v55, %v841_v44  ;;  %v929_v6 = vadd.f32 %v897_v37, %v857_v47  ;;  %v740_v31 = vld [vmem:[#allocation2 + $0x50] sm:$0xff] }
 0x17e   : > { %v1143_v7 = vadd.f32 %v1111_v46, %v1071_v48  ;;  %v1977_v8 = vmul.f32 %v1951_v56, %v754_v41  ;;  %v1980_v9 = vmul.f32 %v1956_v57, %v790_v49  ;;  %v703_v11 = vld [vmem:[#allocation2 + $0x47] sm:$0xff]  ;;  %v1000_v15 = vadd.f32 %v968_v52, %v928_v51  ;;  %v704_v23 = vld [vmem:[#allocation2 + $0x4f] sm:$0xff] }
 0x17f   : > { %2786 = vst [vmem:[#allocation3_spill] sm:$0xff] %v1966_v1  ;;  %2787 = vst [vmem:[#allocation4_spill] sm:$0xff] %v1969_v2  ;;  %v1214_v16 = vadd.f32 %v1182_v58, %v1142_v54  ;;  %v984_v17 = vmul.f32 %v1891_v60, %v789_v61  ;;  %v1994_v18 = vmul.f32 %v1903_v12, %v1917_v20  ;;  %v2005_v32 = vld [vmem:[#allocation2 + $0x51] sm:$0xff]  ;;  %v739_v33 = vld [vmem:[#allocation2 + $0x48] sm:$0xff] }
 0x180   : > { %2788 = vst [vmem:[#allocation5_spill] sm:$0xff] %v1977_v8  ;;  %2789 = vst [vmem:[#allocation6_spill] sm:$0xff] %v1980_v9  ;;  %v944_v24 = vadd.f32 %v912_v63, %v872_v62  ;;  %v1997_v25 = vmul.f32 %v1903_v12, %v718_v28  ;;  %v2000_v26 = vmul.f32 %v1915_v19, %v753_v43  ;;  %v2021_v44 = vld [vmem:[#allocation2 + $0x49] sm:$0xff] }
 0x181   : > { %2790 = vst [vmem:[#allocation7_spill] sm:$0xff] %v1994_v18  ;;  %v2003_v27 = vmul.f32 %v1933_v34, %v789_v61  ;;  %v945_v35 = vadd.f32 %v913_v59, %v873_v3  ;;  %v2009_v36 = vmul.f32 %v1985_v10, %v1917_v20  ;;  %v2012_v37 = vmul.f32 %v1985_v10, %v718_v28  ;;  %v2032_v48 = vld [vmem:[#allocation2 + $0x150] sm:$0xff]  ;;  %v2044_v63 = vld [vmem:[#allocation2 + $0x147] sm:$0xff] }
 0x182   : > { %2791 = vst [vmem:[#allocation8_spill] sm:$0xff] %v1997_v25  ;;  %2792 = vst [vmem:[#allocation9_spill] sm:$0xff] %v2000_v26  ;;  %v1254_v38 = vmul.f32 %v1985_v10, %v703_v11  ;;  %v2016_v39 = vmul.f32 %v1951_v56, %v753_v43  ;;  %v2019_v41 = vmul.f32 %v1956_v57, %v789_v61  ;;  %v2046_v3 = vld [vmem:[#allocation2 + $0x14f] sm:$0xff] }
 0x183   : > { %v1972_v4 = vpop.f32.mrb[6].mxu0  ;;  %v1974_v5 = vpop.f32.mrb[6].mxu1  ;;  %2793 = vst [vmem:[#allocation10_spill] sm:$0xff] %v2003_v27  ;;  %2794 = vst [vmem:[#allocation11_spill] sm:$0xff] %v2009_v36  ;;  %v1215_v46 = vadd.f32 %v1183_v50, %v1143_v7  ;;  %v1255_v47 = vmul.f32 %v1985_v10, %v704_v23  ;;  %v2026_v20 = vmul.f32 %v1875_v53, %v740_v31  ;;  %v2066_v27 = vld [vmem:[#allocation2 + $0x148] sm:$0xff] }
 0x184   : > { %v1987_v13 = vpop.f32.mrb[7].mxu0  ;;  %v1989_v14 = vpop.f32.mrb[7].mxu1  ;;  %2795 = vst [vmem:[#allocation12_spill] sm:$0xff] %v2012_v37  ;;  %2796 = vst [vmem:[#allocation13_spill] sm:$0xff] %v2016_v39  ;;  %v2030_v28 = vmul.f32 %v1891_v60, %v2005_v32  ;;  %v1286_v43 = vadd.f32 %v1254_v38, %v1214_v16  ;;  %v1326_v49 = vmul.f32 %v1951_v56, %v739_v33 }
 0x185   : > { %2797 = vst [vmem:[#allocation14_spill] sm:$0xff] %v2019_v41  ;;  %v1016_v51 = vadd.f32 %v984_v17, %v944_v24  ;;  %v2036_v52 = vmul.f32 %v1915_v19, %v740_v31  ;;  %v1327_v50 = vmul.f32 %v1951_v56, %v740_v31  ;;  %v1287_v54 = vadd.f32 %v1255_v47, %v1215_v46 }
 0x186   : > { %v1399_v58 = vmul.f32 %v1956_v57, %v2005_v32  ;;  %v826_v59 = vmul.f32 %v1864_v42, %v703_v11  ;;  %v1358_v61 = vadd.f32 %v1326_v49, %v1286_v43  ;;  %v1398_v62 = vmul.f32 %v1956_v57, %v2021_v44 }
 0x187   : > { %v2055_v17 = vmul.f32 %v1875_v53, %v2032_v48  ;;  %v827_v24 = vmul.f32 %v1864_v42, %v704_v23  ;;  %v1040_v31 = vmul.f32 %v1903_v12, %v703_v11  ;;  %v1359_v38 = vadd.f32 %v1327_v50, %v1287_v54 }
 0x188   : > { %v2061_v43 = vmul.f32 %v1915_v19, %v2032_v48  ;;  %v898_v49 = vmul.f32 %v1875_v53, %v739_v33  ;;  %v1041_v9 = vmul.f32 %v1903_v12, %v704_v23  ;;  %v1430_v41 = vadd.f32 %v1398_v62, %v1358_v61 }
 0x189   : > { %v1001_v8 = vadd.f32 %v1942_v45, %v929_v6  ;;  %v1431_v2 = vadd.f32 %v1399_v58, %v1359_v38  ;;  %v842_v11 = vmul.f32 %v1864_v42, %v2044_v63  ;;  %v843_v50 = vmul.f32 %v1864_v42, %v2046_v3 }
 0x18a   : > { %v858_v54 = vadd.f32 %v1880_v55, %v826_v59  ;;  %1462 = vst.msk [vmem:[%s2051_s29] sm:$0xff] %vm624_vm1, %v1430_v41  ;;  %v1017_v39 = vadd.f32 %v1963_v0, %v945_v35  ;;  %v1056_v23 = vmul.f32 %v1903_v12, %v2044_v63  ;;  %v1057_v45 = vmul.f32 %v1903_v12, %v2046_v3 }
 0x18b   : > { %v1665_v7 = vpop.f32.mrb[8].mxu0  ;;  %v1689_v16 = vpop.f32.mrb[8].mxu1  ;;  %v859_v6 = vadd.f32 %v1880_v55, %v827_v24  ;;  %v1072_v58 = vadd.f32 %v1040_v31, %v1000_v15  ;;  %v1112_v61 = vmul.f32 %v1915_v19, %v739_v33  ;;  %1463 = vst.msk [vmem:[%s2051_s29 + $0x8] sm:$0xff] %vm624_vm1, %v1431_v2  ;;  %v491_v59 = vadd.f32 %v1919_v21, %v1859_v40 }
 0x18c   : > { %v505_v46 = vpop.f32.mrb[9].mxu0  ;;  %v585_v47 = vpop.f32.mrb[9].mxu1  ;;  %v1073_v62 = vadd.f32 %v1041_v9, %v1001_v8  ;;  %v914_v0 = vmul.f32 %v1875_v53, %v2066_v27  ;;  %v571_v35 = vadd.f32 %v1921_v22, %v1859_v40  ;;  %v486_v41 = vadd.f32 %v1859_v40, %v1925_v29  ;;  %v792_v8 = vld [vmem:[#allocation2 + $0x151] sm:$0xff] }
 0x18d   : > { %v874_v24 = vadd.f32 %v1880_v55, %v842_v11  ;;  %v875_v15 = vadd.f32 %v1880_v55, %v843_v50  ;;  %v1128_v2 = vmul.f32 %v1915_v19, %v2066_v27  ;;  %672 = vst.msk [vmem:[#allocation2 + $0x70] sm:$0xff] %vm624_vm1, %v491_v59  ;;  %v566_v21 = vadd.f32 %v1859_v40, %v1927_v30  ;;  %v791_v11 = vld [vmem:[#allocation2 + $0x149] sm:$0xff] }
 0x18e   : > { %v1088_v9 = vadd.f32 %v1056_v23, %v1016_v51  ;;  %v1089_v33 = vadd.f32 %v1057_v45, %v1017_v39  ;;  %688 = vst.msk [vmem:[#allocation2 + $0x170] sm:$0xff] %vm624_vm1, %v571_v35  ;;  %671 = vst.msk [vmem:[#allocation2 + $0x68] sm:$0xff] %vm624_vm1, %v486_v41  ;;  %v501_v22 = vadd.f32 %v1972_v4, %v1859_v40 }
 0x18f   : > { %v581_v29 = vadd.f32 %v1974_v5, %v1859_v40  ;;  %687 = vst.msk [vmem:[#allocation2 + $0x168] sm:$0xff] %vm624_vm1, %v566_v21  ;;  %v496_v30 = vadd.f32 %v1859_v40, %v1987_v13  ;;  %v576_v39 = vadd.f32 %v1859_v40, %v1989_v14  ;;  %v511_v51 = vadd.f32 %v1665_v7, %v1859_v40 }
 0x190   : > { %v591_v50 = vadd.f32 %v1689_v16, %v1859_v40  ;;  %674 = vst.msk [vmem:[#allocation2 + $0x90] sm:$0xff] %vm624_vm1, %v501_v22  ;;  %v506_v5 = vadd.f32 %v1859_v40, %v505_v46  ;;  %v586_v45 = vadd.f32 %v1859_v40, %v585_v47  ;;  %v987_v14 = vmul.f32 %v1891_v60, %v792_v8 }
 0x191   : > { %690 = vst.msk [vmem:[#allocation2 + $0x190] sm:$0xff] %vm624_vm1, %v581_v29  ;;  %v930_v35 = vadd.f32 %v898_v49, %v858_v54  ;;  %673 = vst.msk [vmem:[#allocation2 + $0x88] sm:$0xff] %vm624_vm1, %v496_v30  ;;  %v1201_v46 = vmul.f32 %v1933_v34, %v792_v8  ;;  %v1144_v47 = vadd.f32 %v1112_v61, %v1072_v58 }
 0x192   : > { %689 = vst.msk [vmem:[#allocation2 + $0x188] sm:$0xff] %vm624_vm1, %v576_v39  ;;  %676 = vst.msk [vmem:[#allocation2 + $0xb0] sm:$0xff] %vm624_vm1, %v511_v51  ;;  %v946_v41 = vadd.f32 %v914_v0, %v874_v24  ;;  %v986_v21 = vmul.f32 %v1891_v60, %v791_v11  ;;  %v931_v49 = vadd.f32 %v2026_v20, %v859_v6 }
 0x193   : > { %v1668_v31 = vpop.f32.mrb[10].mxu0  ;;  %v1692_v38 = vpop.f32.mrb[10].mxu1  ;;  %692 = vst.msk [vmem:[#allocation2 + $0x1b0] sm:$0xff] %vm624_vm1, %v591_v50  ;;  %675 = vst.msk [vmem:[#allocation2 + $0xa8] sm:$0xff] %vm624_vm1, %v506_v5  ;;  %v970_v54 = vmul.f32 %v1891_v60, %v2021_v44  ;;  %v1184_v58 = vmul.f32 %v1933_v34, %v2021_v44  ;;  %v947_v61 = vadd.f32 %v2055_v17, %v875_v15 }
 0x194   : > { %v515_v23 = vpop.f32.mrb[11].mxu0  ;;  %v595_v4 = vpop.f32.mrb[11].mxu1  ;;  %v521_v59 = vadd.f32 %v1668_v31, %v1859_v40  ;;  %v601_v13 = vadd.f32 %v1692_v38, %v1859_v40  ;;  %691 = vst.msk [vmem:[#allocation2 + $0x1a8] sm:$0xff] %vm624_vm1, %v586_v45  ;;  %v1160_v0 = vadd.f32 %v1128_v2, %v1088_v9  ;;  %v1161_v24 = vadd.f32 %v2061_v43, %v1089_v33  ;;  %v778_v15 = vld [vmem:[#allocation2 + $0x71] sm:$0xff] }
 0x195   : > { %v516_v7 = vadd.f32 %v1859_v40, %v515_v23  ;;  %v596_v16 = vadd.f32 %v1859_v40, %v595_v4  ;;  %v1145_v40 = vadd.f32 %v2036_v52, %v1073_v62  ;;  %v1200_v22 = vmul.f32 %v1933_v34, %v791_v11  ;;  %v733_v62 = vld [vmem:[#allocation2 + $0x227] sm:$0xff]  ;;  %v758_v50 = vld [vmem:[#allocation2 + $0x170] sm:$0xff] }
 0x196   : > { %678 = vst.msk [vmem:[#allocation2 + $0xd0] sm:$0xff] %vm624_vm1, %v521_v59  ;;  %694 = vst.msk [vmem:[#allocation2 + $0x1d0] sm:$0xff] %vm624_vm1, %v601_v13  ;;  %v1185_v20 = vmul.f32 %v1933_v34, %v2005_v32  ;;  %v2146_v52 = vmul.f32 %v1951_v56, %v2032_v48  ;;  %v2149_v44 = vmul.f32 %v1956_v57, %v792_v8  ;;  %v742_v32 = vld [vmem:[#allocation2 + $0x70] sm:$0xff]  ;;  %v705_v33 = vld [vmem:[#allocation2 + $0x67] sm:$0xff] }
 0x197   : > { %677 = vst.msk [vmem:[#allocation2 + $0xc8] sm:$0xff] %vm624_vm1, %v516_v7  ;;  %693 = vst.msk [vmem:[#allocation2 + $0x1c8] sm:$0xff] %vm624_vm1, %v596_v16  ;;  %v1002_v6 = vadd.f32 %v970_v54, %v930_v35  ;;  %v1216_v29 = vadd.f32 %v1184_v58, %v1144_v47  ;;  %v2151_v31 = vadd.f32 %v986_v21, %v946_v41  ;;  %v794_v23 = vld [vmem:[#allocation2 + $0x171] sm:$0xff]  ;;  %v741_v13 = vld [vmem:[#allocation2 + $0x68] sm:$0xff] }
 0x198   : > { %2798 = vst [vmem:[#allocation15_spill] sm:$0xff] %v2146_v52  ;;  %2799 = vst [vmem:[#allocation16_spill] sm:$0xff] %v2149_v44  ;;  %v2155_v17 = vmul.f32 %v1985_v10, %v2044_v63  ;;  %v2159_v43 = vmul.f32 %v1985_v10, %v2046_v3  ;;  %v2167_v8 = vmul.f32 %v1951_v56, %v2066_v27  ;;  %v706_v63 = vld [vmem:[#allocation2 + $0x6f] sm:$0xff] }
 0x199   : > { %v2170_v9 = vmul.f32 %v1956_v57, %v791_v11  ;;  %v1003_v38 = vadd.f32 %v2030_v28, %v931_v49  ;;  %v1217_v30 = vadd.f32 %v1185_v20, %v1145_v40  ;;  %v2177_v51 = vadd.f32 %v1200_v22, %v1160_v0  ;;  %v777_v49 = vld [vmem:[#allocation2 + $0x69] sm:$0xff] }
 0x19a   : > { %2800 = vst [vmem:[#allocation17_spill] sm:$0xff] %v2155_v17  ;;  %2801 = vst [vmem:[#allocation18_spill] sm:$0xff] %v2159_v43  ;;  %v2179_v4 = vadd.f32 %v987_v14, %v947_v61  ;;  %v1233_v27 = vadd.f32 %v1201_v46, %v1161_v24  ;;  %v2182_v5 = vmul.f32 %v1985_v10, %v733_v62  ;;  %v721_v46 = vld [vmem:[#allocation2 + $0x167] sm:$0xff] }
 0x19b   : > { %v2161_v48 = vpop.f32.mrb[12].mxu0  ;;  %v2163_v2 = vpop.f32.mrb[12].mxu1  ;;  %2802 = vst [vmem:[#allocation19_spill] sm:$0xff] %v2167_v8  ;;  %2803 = vst [vmem:[#allocation20_spill] sm:$0xff] %v2170_v9  ;;  %v2185_v11 = vmul.f32 %v1875_v53, %v742_v32  ;;  %v2188_v28 = vmul.f32 %v1891_v60, %v778_v15  ;;  %v2191_v45 = vmul.f32 %v1915_v19, %v742_v32  ;;  %v793_v43 = vld [vmem:[#allocation2 + $0x169] sm:$0xff] }
 0x19c   : > { %v2173_v3 = vpop.f32.mrb[13].mxu0  ;;  %v2175_v39 = vpop.f32.mrb[13].mxu1  ;;  %2804 = vst [vmem:[#allocation21_spill] sm:$0xff] %v2182_v5  ;;  %v2194_v59 = vmul.f32 %v1933_v34, %v778_v15  ;;  %v1329_v14 = vmul.f32 %v1951_v56, %v742_v32  ;;  %v1401_v35 = vmul.f32 %v1956_v57, %v778_v15  ;;  %v1256_v7 = vmul.f32 %v1985_v10, %v705_v33 }
 0x19d   : > { %v1257_v16 = vmul.f32 %v1985_v10, %v706_v63  ;;  %v2201_v47 = vmul.f32 %v1875_v53, %v758_v50  ;;  %v2204_v41 = vmul.f32 %v1891_v60, %v794_v23  ;;  %v2207_v21 = vmul.f32 %v1915_v19, %v758_v50 }
 0x19e   : > { %v828_v54 = vmul.f32 %v1864_v42, %v705_v33  ;;  %v1042_v40 = vmul.f32 %v1903_v12, %v705_v33  ;;  %v1288_v58 = vadd.f32 %v1256_v7, %v1216_v29  ;;  %v1328_v0 = vmul.f32 %v1951_v56, %v741_v13  ;;  %v722_v33 = vld [vmem:[#allocation2 + $0x16f] sm:$0xff] }
 0x19f   : > { %v1289_v61 = vadd.f32 %v1257_v16, %v1217_v30  ;;  %v2213_v24 = vmul.f32 %v1933_v34, %v794_v23  ;;  %v1345_v22 = vmul.f32 %v1951_v56, %v758_v50  ;;  %v829_v20 = vmul.f32 %v1864_v42, %v706_v63  ;;  %v757_v29 = vld [vmem:[#allocation2 + $0x168] sm:$0xff] }
 0x1a0   : > { %v844_v62 = vmul.f32 %v1864_v42, %v721_v46  ;;  %v1043_v32 = vmul.f32 %v1903_v12, %v706_v63  ;;  %v1360_v15 = vadd.f32 %v1328_v0, %v1288_v58  ;;  %v1400_v9 = vmul.f32 %v1956_v57, %v777_v49 }
 0x1a1   : > { %v1361_v44 = vadd.f32 %v1329_v14, %v1289_v61  ;;  %v1417_v16 = vmul.f32 %v1956_v57, %v794_v23  ;;  %v860_v50 = vadd.f32 %v1880_v55, %v828_v54  ;;  %v900_v5 = vmul.f32 %v1875_v53, %v741_v13 }
 0x1a2   : > { %v1114_v63 = vmul.f32 %v1915_v19, %v741_v13  ;;  %v1074_v61 = vadd.f32 %v1042_v40, %v1002_v6  ;;  %v1432_v0 = vadd.f32 %v1400_v9, %v1360_v15  ;;  %v1058_v8 = vmul.f32 %v1903_v12, %v721_v46 }
 0x1a3   : > { %v2220_v30 = vpop.f32.mrb[14].mxu0  ;;  %v2222_v7 = vpop.f32.mrb[14].mxu1  ;;  %v1433_v52 = vadd.f32 %v1401_v35, %v1361_v44  ;;  %v845_v23 = vmul.f32 %v1864_v42, %v722_v33  ;;  %v876_v54 = vadd.f32 %v1880_v55, %v844_v62  ;;  %v916_v17 = vmul.f32 %v1875_v53, %v757_v29 }
 0x1a4   : > { %v2228_v58 = vpop.f32.mrb[15].mxu0  ;;  %v2230_v14 = vpop.f32.mrb[15].mxu1  ;;  %v1059_v37 = vmul.f32 %v1903_v12, %v722_v33  ;;  %v861_v13 = vadd.f32 %v1880_v55, %v829_v20  ;;  %v1075_v1 = vadd.f32 %v1043_v32, %v1003_v38  ;;  %1464 = vst.msk [vmem:[%s2051_s29 + $0x10] sm:$0xff] %vm624_vm1, %v1432_v0  ;;  %v1272_v44 = vmul.f32 %v1985_v10, %v721_v46 }
 0x1a5   : > { %1465 = vst.msk [vmem:[%s2051_s29 + $0x18] sm:$0xff] %vm624_vm1, %v1433_v52  ;;  %v1273_v6 = vmul.f32 %v1985_v10, %v722_v33  ;;  %v932_v9 = vadd.f32 %v900_v5, %v860_v50  ;;  %v1090_v35 = vadd.f32 %v1058_v8, %v2151_v31  ;;  %v1130_v40 = vmul.f32 %v1915_v19, %v757_v29 }
 0x1a6   : > { %v1344_v62 = vmul.f32 %v1951_v56, %v757_v29  ;;  %v1146_v15 = vadd.f32 %v1114_v63, %v1074_v61  ;;  %v1304_v26 = vadd.f32 %v1272_v44, %v2177_v51  ;;  %v1416_v38 = vmul.f32 %v1956_v57, %v793_v43  ;;  %v744_v29 = vld [vmem:[#allocation2 + $0x90] sm:$0xff] }
 0x1a7   : > { %v1305_v20 = vadd.f32 %v1273_v6, %v1233_v27  ;;  %v877_v32 = vadd.f32 %v1880_v55, %v845_v23  ;;  %v948_v52 = vadd.f32 %v916_v17, %v876_v54  ;;  %v988_v46 = vmul.f32 %v1891_v60, %v793_v43  ;;  %v780_v61 = vld [vmem:[#allocation2 + $0x91] sm:$0xff] }
 0x1a8   : > { %v1091_v33 = vadd.f32 %v1059_v37, %v2179_v4  ;;  %v972_v5 = vmul.f32 %v1891_v60, %v777_v49  ;;  %v1186_v31 = vmul.f32 %v1933_v34, %v777_v49  ;;  %v1376_v8 = vadd.f32 %v1344_v62, %v1304_v26  ;;  %v760_v54 = vld [vmem:[#allocation2 + $0x190] sm:$0xff] }
 0x1a9   : > { %v1377_v50 = vadd.f32 %v1345_v22, %v1305_v20  ;;  %v933_v63 = vadd.f32 %v2185_v11, %v861_v13  ;;  %v1147_v51 = vadd.f32 %v2191_v45, %v1075_v1  ;;  %v1162_v27 = vadd.f32 %v1130_v40, %v1090_v35  ;;  %v707_v13 = vld [vmem:[#allocation2 + $0x87] sm:$0xff]  ;;  %v708_v1 = vld [vmem:[#allocation2 + $0x8f] sm:$0xff] }
 0x1aa   : > { %v1202_v17 = vmul.f32 %v1933_v34, %v793_v43  ;;  %v1004_v0 = vadd.f32 %v972_v5, %v932_v9  ;;  %v1218_v23 = vadd.f32 %v1186_v31, %v1146_v15  ;;  %v1448_v37 = vadd.f32 %v1416_v38, %v1376_v8  ;;  %v743_v40 = vld [vmem:[#allocation2 + $0x88] sm:$0xff] }
 0x1ab   : > { %v1449_v4 = vadd.f32 %v1417_v16, %v1377_v50  ;;  %v949_v49 = vadd.f32 %v2201_v47, %v877_v32  ;;  %v1020_v26 = vadd.f32 %v988_v46, %v948_v52  ;;  %v1163_v22 = vadd.f32 %v2207_v21, %v1091_v33  ;;  %v2276_v16 = vld [vmem:[#allocation2 + $0x191] sm:$0xff]  ;;  %v779_v15 = vld [vmem:[#allocation2 + $0x89] sm:$0xff] }
 0x1ac   : > { %v2260_v11 = vmul.f32 %v1875_v53, %v744_v29  ;;  %1480 = vst.msk [vmem:[%s2051_s29 + $0x90] sm:$0xff] %vm624_vm1, %v1448_v37  ;;  %v2267_v43 = vmul.f32 %v1891_v60, %v780_v61  ;;  %v2270_v45 = vmul.f32 %v1915_v19, %v744_v29  ;;  %v2273_v47 = vmul.f32 %v1933_v34, %v780_v61  ;;  %v723_v52 = vld [vmem:[#allocation2 + $0x187] sm:$0xff] }
 0x1ad   : > { %1481 = vst.msk [vmem:[%s2051_s29 + $0x98] sm:$0xff] %vm624_vm1, %v1449_v4  ;;  %v1331_v21 = vmul.f32 %v1951_v56, %v744_v29  ;;  %v1234_v44 = vadd.f32 %v1202_v17, %v1162_v27  ;;  %v1403_v6 = vmul.f32 %v1956_v57, %v780_v61  ;;  %v2280_v9 = vmul.f32 %v1875_v53, %v760_v54  ;;  %v724_v61 = vld [vmem:[#allocation2 + $0x18f] sm:$0xff] }
 0x1ae   : > { %v2283_v35 = vmul.f32 %v1915_v19, %v760_v54  ;;  %v1347_v62 = vmul.f32 %v1951_v56, %v760_v54  ;;  %v1219_v20 = vadd.f32 %v2194_v59, %v1147_v51  ;;  %v1258_v38 = vmul.f32 %v1985_v10, %v707_v13  ;;  %v759_v37 = vld [vmem:[#allocation2 + $0x188] sm:$0xff] }
 0x1af   : > { %v1259_v32 = vmul.f32 %v1985_v10, %v708_v1  ;;  %v1419_v46 = vmul.f32 %v1956_v57, %v2276_v16  ;;  %v830_v33 = vmul.f32 %v1864_v42, %v707_v13  ;;  %v831_v5 = vmul.f32 %v1864_v42, %v708_v1 }
 0x1b0   : > { %v1044_v31 = vmul.f32 %v1903_v12, %v707_v13  ;;  %v902_v8 = vmul.f32 %v1875_v53, %v743_v40  ;;  %v1290_v50 = vadd.f32 %v1258_v38, %v1218_v23  ;;  %v1330_v59 = vmul.f32 %v1951_v56, %v743_v40 }
 0x1b1   : > { %v1291_v29 = vadd.f32 %v1259_v32, %v1219_v20  ;;  %v974_v51 = vmul.f32 %v1891_v60, %v779_v15  ;;  %v1005_v27 = vadd.f32 %v2188_v28, %v933_v63  ;;  %v1045_v17 = vmul.f32 %v1903_v12, %v708_v1 }
 0x1b2   : > { %v846_v4 = vmul.f32 %v1864_v42, %v723_v52  ;;  %v1116_v54 = vmul.f32 %v1915_v19, %v743_v40  ;;  %v1362_v36 = vadd.f32 %v1330_v59, %v1290_v50  ;;  %v1402_v23 = vmul.f32 %v1956_v57, %v779_v15  ;;  %v795_v40 = vld [vmem:[#allocation2 + $0x189] sm:$0xff] }
 0x1b3   : > { %v1363_v13 = vadd.f32 %v1331_v21, %v1291_v29  ;;  %v862_v20 = vadd.f32 %v1880_v55, %v830_v33  ;;  %v863_v38 = vadd.f32 %v1880_v55, %v831_v5  ;;  %v1076_v32 = vadd.f32 %v1044_v31, %v1004_v0 }
 0x1b4   : > { %v1060_v28 = vmul.f32 %v1903_v12, %v723_v52  ;;  %v1434_v63 = vadd.f32 %v1402_v23, %v1362_v36  ;;  %v847_v25 = vmul.f32 %v1864_v42, %v724_v61  ;;  %v918_v18 = vmul.f32 %v1875_v53, %v759_v37 }
 0x1b5   : > { %v1435_v1 = vadd.f32 %v1403_v6, %v1363_v13  ;;  %v878_v50 = vadd.f32 %v1880_v55, %v846_v4  ;;  %v1021_v21 = vadd.f32 %v2204_v41, %v949_v49  ;;  %v1061_v29 = vmul.f32 %v1903_v12, %v724_v61 }
 0x1b6   : > { %v1132_v33 = vmul.f32 %v1915_v19, %v759_v37  ;;  %1466 = vst.msk [vmem:[%s2051_s29 + $0x20] sm:$0xff] %vm624_vm1, %v1434_v63  ;;  %v1092_v0 = vadd.f32 %v1060_v28, %v1020_v26  ;;  %v1235_v36 = vadd.f32 %v2213_v24, %v1163_v22  ;;  %v1274_v6 = vmul.f32 %v1985_v10, %v723_v52 }
 0x1b7   : > { %1467 = vst.msk [vmem:[%s2051_s29 + $0x28] sm:$0xff] %vm624_vm1, %v1435_v1  ;;  %v1275_v5 = vmul.f32 %v1985_v10, %v724_v61  ;;  %v934_v31 = vadd.f32 %v902_v8, %v862_v20  ;;  %v1077_v59 = vadd.f32 %v1045_v17, %v1005_v27  ;;  %v1188_v4 = vmul.f32 %v1933_v34, %v779_v15  ;;  %v746_v17 = vld [vmem:[#allocation2 + $0xb0] sm:$0xff] }
 0x1b8   : > { %v1346_v41 = vmul.f32 %v1951_v56, %v759_v37  ;;  %v1148_v49 = vadd.f32 %v1116_v54, %v1076_v32  ;;  %v1306_v13 = vadd.f32 %v1274_v6, %v1234_v44  ;;  %v1418_v63 = vmul.f32 %v1956_v57, %v795_v40  ;;  %v782_v37 = vld [vmem:[#allocation2 + $0xb1] sm:$0xff]  ;;  %v745_v6 = vld [vmem:[#allocation2 + $0xa8] sm:$0xff] }
 0x1b9   : > { %v1307_v23 = vadd.f32 %v1275_v5, %v1235_v36  ;;  %v879_v1 = vadd.f32 %v1880_v55, %v847_v25  ;;  %v950_v26 = vadd.f32 %v918_v18, %v878_v50  ;;  %v990_v24 = vmul.f32 %v1891_v60, %v795_v40 }
 0x1ba   : > { %v1093_v22 = vadd.f32 %v1061_v29, %v1021_v21  ;;  %v1164_v52 = vadd.f32 %v1132_v33, %v1092_v0  ;;  %v1204_v61 = vmul.f32 %v1933_v34, %v795_v40  ;;  %v1378_v8 = vadd.f32 %v1346_v41, %v1306_v13  ;;  %v709_v29 = vld [vmem:[#allocation2 + $0xa7] sm:$0xff]  ;;  %v710_v33 = vld [vmem:[#allocation2 + $0xaf] sm:$0xff] }
 0x1bb   : > { %v1379_v27 = vadd.f32 %v1347_v62, %v1307_v23  ;;  %v991_v15 = vmul.f32 %v1891_v60, %v2276_v16  ;;  %v2328_v44 = vmul.f32 %v1933_v34, %v2276_v16  ;;  %v935_v25 = vadd.f32 %v2260_v11, %v863_v38  ;;  %v762_v62 = vld [vmem:[#allocation2 + $0x1b0] sm:$0xff] }
 0x1bc   : > { %v1149_v18 = vadd.f32 %v2270_v45, %v1077_v59  ;;  %v1006_v54 = vadd.f32 %v974_v51, %v934_v31  ;;  %v1220_v20 = vadd.f32 %v1188_v4, %v1148_v49  ;;  %v1450_v32 = vadd.f32 %v1418_v63, %v1378_v8  ;;  %v781_v31 = vld [vmem:[#allocation2 + $0xa9] sm:$0xff] }
 0x1bd   : > { %v1451_v28 = vadd.f32 %v1419_v46, %v1379_v27  ;;  %v951_v40 = vadd.f32 %v2280_v9, %v879_v1  ;;  %v1022_v50 = vadd.f32 %v990_v24, %v950_v26  ;;  %v1165_v21 = vadd.f32 %v2283_v35, %v1093_v22  ;;  %v2350_v35 = vld [vmem:[#allocation2 + $0x1b1] sm:$0xff]  ;;  %v725_v49 = vld [vmem:[#allocation2 + $0x1a7] sm:$0xff] }
 0x1be   : > { %v2335_v16 = vmul.f32 %v1875_v53, %v746_v17  ;;  %v1236_v11 = vadd.f32 %v1204_v61, %v1164_v52  ;;  %1482 = vst.msk [vmem:[%s2051_s29 + $0xa0] sm:$0xff] %vm624_vm1, %v1450_v32  ;;  %v2342_v45 = vmul.f32 %v1891_v60, %v782_v37  ;;  %v2345_v46 = vmul.f32 %v1915_v19, %v746_v17  ;;  %v726_v27 = vld [vmem:[#allocation2 + $0x1af] sm:$0xff] }
 0x1bf   : > { %1483 = vst.msk [vmem:[%s2051_s29 + $0xa8] sm:$0xff] %vm624_vm1, %v1451_v28  ;;  %v2348_v9 = vmul.f32 %v1933_v34, %v782_v37  ;;  %v1333_v51 = vmul.f32 %v1951_v56, %v746_v17  ;;  %v1405_v38 = vmul.f32 %v1956_v57, %v782_v37  ;;  %v2355_v0 = vmul.f32 %v1875_v53, %v762_v62  ;;  %v761_v17 = vld [vmem:[#allocation2 + $0x1a8] sm:$0xff] }
 0x1c0   : > { %v2358_v36 = vmul.f32 %v1915_v19, %v762_v62  ;;  %v1349_v5 = vmul.f32 %v1951_v56, %v762_v62  ;;  %v1221_v59 = vadd.f32 %v2273_v47, %v1149_v18  ;;  %v1260_v4 = vmul.f32 %v1985_v10, %v709_v29 }
 0x1c1   : > { %v1261_v41 = vmul.f32 %v1985_v10, %v710_v33  ;;  %v1421_v13 = vmul.f32 %v1956_v57, %v2350_v35  ;;  %v832_v23 = vmul.f32 %v1864_v42, %v709_v29  ;;  %v833_v63 = vmul.f32 %v1864_v42, %v710_v33 }
 0x1c2   : > { %v1046_v1 = vmul.f32 %v1903_v12, %v709_v29  ;;  %v904_v26 = vmul.f32 %v1875_v53, %v745_v6  ;;  %v1292_v24 = vadd.f32 %v1260_v4, %v1220_v20  ;;  %v1332_v47 = vmul.f32 %v1951_v56, %v745_v6 }
 0x1c3   : > { %v1293_v22 = vadd.f32 %v1261_v41, %v1221_v59  ;;  %v976_v52 = vmul.f32 %v1891_v60, %v781_v31  ;;  %v1007_v61 = vadd.f32 %v2267_v43, %v935_v25  ;;  %v1047_v8 = vmul.f32 %v1903_v12, %v710_v33 }
 0x1c4   : > { %v848_v18 = vmul.f32 %v1864_v42, %v725_v49  ;;  %v1118_v37 = vmul.f32 %v1915_v19, %v745_v6  ;;  %v1364_v32 = vadd.f32 %v1332_v47, %v1292_v24  ;;  %v1404_v20 = vmul.f32 %v1956_v57, %v781_v31  ;;  %v797_v6 = vld [vmem:[#allocation2 + $0x1a9] sm:$0xff] }
 0x1c5   : > { %v1365_v28 = vadd.f32 %v1333_v51, %v1293_v22  ;;  %v864_v62 = vadd.f32 %v1880_v55, %v832_v23  ;;  %v865_v29 = vadd.f32 %v1880_v55, %v833_v63  ;;  %v1078_v59 = vadd.f32 %v1046_v1, %v1006_v54 }
 0x1c6   : > { %v1062_v43 = vmul.f32 %v1903_v12, %v725_v49  ;;  %v1436_v25 = vadd.f32 %v1404_v20, %v1364_v32  ;;  %v849_v4 = vmul.f32 %v1864_v42, %v726_v27  ;;  %v920_v41 = vmul.f32 %v1875_v53, %v761_v17 }
 0x1c7   : > { %v1437_v33 = vadd.f32 %v1405_v38, %v1365_v28  ;;  %v880_v24 = vadd.f32 %v1880_v55, %v848_v18  ;;  %v1023_v51 = vadd.f32 %v991_v15, %v951_v40  ;;  %v1063_v22 = vmul.f32 %v1903_v12, %v726_v27 }
 0x1c8   : > { %v1134_v47 = vmul.f32 %v1915_v19, %v761_v17  ;;  %1468 = vst.msk [vmem:[%s2051_s29 + $0x30] sm:$0xff] %vm624_vm1, %v1436_v25  ;;  %v1094_v54 = vadd.f32 %v1062_v43, %v1022_v50  ;;  %v1237_v23 = vadd.f32 %v2328_v44, %v1165_v21  ;;  %v1276_v38 = vmul.f32 %v1985_v10, %v725_v49 }
 0x1c9   : > { %1469 = vst.msk [vmem:[%s2051_s29 + $0x38] sm:$0xff] %vm624_vm1, %v1437_v33  ;;  %v1277_v42 = vmul.f32 %v1985_v10, %v726_v27  ;;  %v936_v63 = vadd.f32 %v904_v26, %v864_v62  ;;  %v1079_v1 = vadd.f32 %v1047_v8, %v1007_v61  ;;  %v1190_v18 = vmul.f32 %v1933_v34, %v781_v31  ;;  %v711_v8 = vld [vmem:[#allocation2 + $0xc7] sm:$0xff]  ;;  %v2408_v33 = vld [vmem:[#allocation2 + $0xd1] sm:$0xff] }
 0x1ca   : > { %v1348_v15 = vmul.f32 %v1951_v56, %v761_v17  ;;  %v1150_v40 = vadd.f32 %v1118_v37, %v1078_v59  ;;  %v1308_v32 = vadd.f32 %v1276_v38, %v1236_v11  ;;  %v1420_v20 = vmul.f32 %v1956_v57, %v797_v6  ;;  %v748_v37 = vld [vmem:[#allocation2 + $0xd0] sm:$0xff] }
 0x1cb   : > { %v1309_v28 = vadd.f32 %v1277_v42, %v1237_v23  ;;  %v881_v25 = vadd.f32 %v1880_v55, %v849_v4  ;;  %v952_v50 = vadd.f32 %v920_v41, %v880_v24  ;;  %v992_v44 = vmul.f32 %v1891_v60, %v797_v6  ;;  %v764_v4 = vld [vmem:[#allocation2 + $0x1d0] sm:$0xff]  ;;  %v747_v23 = vld [vmem:[#allocation2 + $0xc8] sm:$0xff] }
 0x1cc   : > { %v1095_v21 = vadd.f32 %v1063_v22, %v1023_v51  ;;  %v1166_v49 = vadd.f32 %v1134_v47, %v1094_v54  ;;  %v1206_v27 = vmul.f32 %v1933_v34, %v797_v6  ;;  %v1380_v26 = vadd.f32 %v1348_v15, %v1308_v32  ;;  %v800_v41 = vld [vmem:[#allocation2 + $0x1d1] sm:$0xff]  ;;  %v2451_v15 = vld [vmem:[#allocation2 + $0xc9] sm:$0xff] }
 0x1cd   : > { %v1381_v61 = vadd.f32 %v1349_v5, %v1309_v28  ;;  %v2400_v31 = vmul.f32 %v1891_v60, %v2350_v35  ;;  %v2404_v11 = vmul.f32 %v1933_v34, %v2350_v35  ;;  %v937_v55 = vadd.f32 %v2335_v16, %v865_v29  ;;  %v712_v16 = vld [vmem:[#allocation2 + $0xcf] sm:$0xff]  ;;  %v727_v32 = vld [vmem:[#allocation2 + $0x1c7] sm:$0xff] }
 0x1ce   : > { %v1151_v17 = vadd.f32 %v2345_v46, %v1079_v1  ;;  %v1008_v62 = vadd.f32 %v976_v52, %v936_v63  ;;  %v1222_v59 = vadd.f32 %v1190_v18, %v1150_v40  ;;  %v1452_v43 = vadd.f32 %v1420_v20, %v1380_v26  ;;  %v2417_v46 = vld [vmem:[%s2783_s3] ss:$0 sm:$0xff] }
 0x1cf   : > { %v1453_v5 = vadd.f32 %v1421_v13, %v1381_v61  ;;  %v953_v6 = vadd.f32 %v2355_v0, %v881_v25  ;;  %v2411_v24 = vadd.f32 %v992_v44, %v952_v50  ;;  %v1167_v35 = vadd.f32 %v2358_v36, %v1095_v21  ;;  %v2466_v44 = vld [vmem:[%s2783_s3 + $0x1] ss:$0 sm:$0xff] }
 0x1d0   : > { %v834_v52 = vmul.f32 %v2417_v46, %v711_v8  ;;  %v2420_v29 = vadd.f32 %v1206_v27, %v1166_v49  ;;  %1484 = vst.msk [vmem:[%s2051_s29 + $0xb0] sm:$0xff] %vm624_vm1, %v1452_v43  ;;  %v2427_v0 = vmul.f32 %v1875_v53, %v748_v37  ;;  %v2430_v13 = vmul.f32 %v1915_v19, %v748_v37 }
 0x1d1   : > { %1485 = vst.msk [vmem:[%s2051_s29 + $0xb8] sm:$0xff] %vm624_vm1, %v1453_v5  ;;  %v1048_v36 = vmul.f32 %v1903_v12, %v711_v8  ;;  %v1335_v51 = vmul.f32 %v1951_v56, %v748_v37  ;;  %v1407_v22 = vmul.f32 %v1956_v57, %v2408_v33  ;;  %v2437_v47 = vmul.f32 %v1875_v53, %v764_v4 }
 0x1d2   : > { %v2440_v54 = vmul.f32 %v1891_v60, %v800_v41  ;;  %v2443_v38 = vmul.f32 %v1915_v19, %v764_v4  ;;  %v1223_v42 = vadd.f32 %v2348_v9, %v1151_v17  ;;  %v1262_v63 = vmul.f32 %v1985_v10, %v711_v8  ;;  %v2457_v60 = vld [vmem:[%s2784_s4] ss:$0 sm:$0xff]  ;;  %v728_v8 = vld [vmem:[#allocation2 + $0x1cf] sm:$0xff] }
 0x1d3   : > { %v1263_v1 = vmul.f32 %v1985_v10, %v712_v16  ;;  %v2449_v18 = vmul.f32 %v1933_v34, %v800_v41  ;;  %v835_v53 = vmul.f32 %v2417_v46, %v712_v16  ;;  %v866_v40 = vadd.f32 %v2457_v60, %v834_v52  ;;  %v763_v17 = vld [vmem:[#allocation2 + $0x1c8] sm:$0xff] }
 0x1d4   : > { %v1049_v9 = vmul.f32 %v1903_v12, %v712_v16  ;;  %v1080_v28 = vadd.f32 %v1048_v36, %v1008_v62  ;;  %v1294_v20 = vadd.f32 %v1262_v63, %v1222_v59  ;;  %v1334_v34 = vmul.f32 %v1951_v56, %v747_v23  ;;  %v799_v52 = vld [vmem:[#allocation2 + $0x1c9] sm:$0xff] }
 0x1d5   : > { %v1295_v25 = vadd.f32 %v1263_v1, %v1223_v42  ;;  %v1351_v50 = vmul.f32 %v1951_v56, %v764_v4  ;;  %v906_v21 = vmul.f32 %v2466_v44, %v747_v23  ;;  %v1009_v49 = vadd.f32 %v2342_v45, %v937_v55 }
 0x1d6   : > { %v1120_v27 = vmul.f32 %v1915_v19, %v747_v23  ;;  %v1366_v12 = vadd.f32 %v1334_v34, %v1294_v20  ;;  %v1406_v61 = vmul.f32 %v1956_v57, %v2451_v15  ;;  %v850_v37 = vmul.f32 %v2417_v46, %v727_v32  ;;  %v2479_v19 = vld [vmem:[%s2783_s3 + $0x3] ss:$0 sm:$0xff] }
 0x1d7   : > { %v1367_v26 = vadd.f32 %v1335_v51, %v1295_v25  ;;  %v1423_v62 = vmul.f32 %v1956_v57, %v800_v41  ;;  %v867_v59 = vadd.f32 %v2457_v60, %v835_v53  ;;  %v1081_v43 = vadd.f32 %v1049_v9, %v1009_v49  ;;  %v2501_v53 = vld [vmem:[%s2783_s3 + $0x2] ss:$0 sm:$0xff] }
 0x1d8   : > { %v1064_v45 = vmul.f32 %v2479_v19, %v727_v32  ;;  %v2482_v55 = vadd.f32 %v906_v21, %v866_v40  ;;  %v2484_v5 = vadd.f32 %v1120_v27, %v1080_v28  ;;  %v1438_v4 = vadd.f32 %v1406_v61, %v1366_v12  ;;  %v2508_v40 = vld [vmem:[%s2783_s3 + $0x4] ss:$0 sm:$0xff]  ;;  %v1720_v28 = vld [vmem:[%s2782_s2] ss:$0 sm:$0xff]  ;;  %v2526_v12 = vld [vmem:[%s2783_s3 + $0x5] ss:$0 sm:$0xff] }
 0x1d9   : > { %v1439_v16 = vadd.f32 %v1407_v22, %v1367_v26  ;;  %v851_v36 = vmul.f32 %v2417_v46, %v728_v8  ;;  %v922_v41 = vmul.f32 %v2466_v44, %v763_v17  ;;  %v1025_v51 = vadd.f32 %v2400_v31, %v953_v6  ;;  %v769_v26 = vld [vmem:[#allocation2 + $0x228] sm:$0xff] }
 0x1da   : > { %v1065_v23 = vmul.f32 %v2479_v19, %v728_v8  ;;  %1470 = vst.msk [vmem:[%s2051_s29 + $0x40] sm:$0xff] %vm624_vm1, %v1438_v4  ;;  %v882_v42 = vadd.f32 %v2457_v60, %v850_v37  ;;  %v1239_v63 = vadd.f32 %v2404_v11, %v1167_v35  ;;  %v1278_v1 = vmul.f32 %v1985_v10, %v727_v32  ;;  %v770_v37 = vld [vmem:[#allocation2 + $0x230] sm:$0xff] }
 0x1db   : > { %1471 = vst.msk [vmem:[%s2051_s29 + $0x48] sm:$0xff] %vm624_vm1, %v1439_v16  ;;  %v1279_v22 = vmul.f32 %v1985_v10, %v728_v8  ;;  %v994_v31 = vmul.f32 %v2501_v53, %v799_v52  ;;  %v1096_v6 = vadd.f32 %v1064_v45, %v2411_v24  ;;  %v1136_v11 = vmul.f32 %v2508_v40, %v763_v17  ;;  %v805_v45 = vld [vmem:[#allocation2 + $0x229] sm:$0xff] }
 0x1dc   : > { %v1350_v35 = vmul.f32 %v1951_v56, %v763_v17  ;;  %v1310_v10 = vadd.f32 %v1278_v1, %v2420_v29  ;;  %v1422_v32 = vmul.f32 %v1956_v57, %v799_v52  ;;  %v531_v24 = vadd.f32 %v1720_v28, %v2161_v48 }
 0x1dd   : > { %v1311_v9 = vadd.f32 %v1279_v22, %v1239_v63  ;;  %v883_v20 = vadd.f32 %v2457_v60, %v851_v36  ;;  %v1097_v25 = vadd.f32 %v1065_v23, %v1025_v51  ;;  %v611_v34 = vadd.f32 %v1720_v28, %v2163_v2 }
 0x1de   : > { %v526_v21 = vadd.f32 %v1720_v28, %v2173_v3  ;;  %v954_v49 = vadd.f32 %v922_v41, %v882_v42  ;;  %v1382_v56 = vadd.f32 %v1350_v35, %v1310_v10  ;;  %680 = vst.msk [vmem:[#allocation2 + $0xf0] sm:$0xff] %vm624_vm1, %v531_v24  ;;  %v606_v57 = vadd.f32 %v1720_v28, %v2175_v39 }
 0x1df   : > { %v1383_v27 = vadd.f32 %v1351_v50, %v1311_v9  ;;  %v1168_v29 = vadd.f32 %v1136_v11, %v1096_v6  ;;  %v1208_v48 = vmul.f32 %v2526_v12, %v799_v52  ;;  %696 = vst.msk [vmem:[#allocation2 + $0x1f0] sm:$0xff] %vm624_vm1, %v611_v34  ;;  %v541_v2 = vadd.f32 %v1720_v28, %v2220_v30  ;;  %v734_v50 = vld [vmem:[#allocation2 + $0x22f] sm:$0xff] }
 0x1e0   : > { %679 = vst.msk [vmem:[#allocation2 + $0xe8] sm:$0xff] %vm624_vm1, %v526_v21  ;;  %v621_v3 = vadd.f32 %v1720_v28, %v2222_v7  ;;  %v1454_v39 = vadd.f32 %v1422_v32, %v1382_v56  ;;  %695 = vst.msk [vmem:[#allocation2 + $0x1e8] sm:$0xff] %vm624_vm1, %v606_v57  ;;  %v536_v8 = vadd.f32 %v1720_v28, %v2228_v58 }
 0x1e1   : > { %v1455_v61 = vadd.f32 %v1423_v62, %v1383_v27  ;;  %v616_v17 = vadd.f32 %v1720_v28, %v2230_v14  ;;  %v939_v4 = vadd.f32 %v2427_v0, %v867_v59  ;;  %v1153_v30 = vadd.f32 %v2430_v13, %v1081_v43  ;;  %682 = vst.msk [vmem:[#allocation2 + $0x110] sm:$0xff] %vm624_vm1, %v541_v2  ;;  %v2555_v14 = vld [vmem:[%s2783_s3 + $0x6] ss:$0 sm:$0xff]  ;;  %v2563_v13 = vld [vmem:[%s2783_s3 + $0x7] ss:$0 sm:$0xff] }
 0x1e2   : > { %v955_v7 = vadd.f32 %v2437_v47, %v883_v20  ;;  %v1169_v16 = vadd.f32 %v2443_v38, %v1097_v25  ;;  %698 = vst.msk [vmem:[#allocation2 + $0x210] sm:$0xff] %vm624_vm1, %v621_v3  ;;  %v978_v62 = vmul.f32 %v2501_v53, %v2451_v15  ;;  %v1192_v58 = vmul.f32 %v2526_v12, %v2451_v15  ;;  %v2578_v43 = vld [vmem:[%s2783_s3 + $0x8] ss:$0 sm:$0xff] }
 0x1e3   : > { %1486 = vst.msk [vmem:[%s2051_s29 + $0xc0] sm:$0xff] %vm624_vm1, %v1454_v39  ;;  %1487 = vst.msk [vmem:[%s2051_s29 + $0xc8] sm:$0xff] %vm624_vm1, %v1455_v61  ;;  %v2558_v0 = vmul.f32 %v2555_v14, %v734_v50  ;;  %v2566_v47 = vmul.f32 %v2563_v13, %v769_v26  ;;  %v979_v38 = vmul.f32 %v2501_v53, %v2408_v33 }
 0x1e4   : > { %681 = vst.msk [vmem:[#allocation2 + $0x108] sm:$0xff] %vm624_vm1, %v536_v8  ;;  %697 = vst.msk [vmem:[#allocation2 + $0x208] sm:$0xff] %vm624_vm1, %v616_v17  ;;  %v1193_v15 = vmul.f32 %v2526_v12, %v2408_v33  ;;  %v2573_v59 = vmul.f32 %v2563_v13, %v770_v37  ;;  %v2581_v52 = vmul.f32 %v2578_v43, %v805_v45 }
 0x1e5   : > { %v1010_v36 = vadd.f32 %v978_v62, %v2482_v55  ;;  %v1224_v41 = vadd.f32 %v1192_v58, %v2484_v5  ;;  %v2585_v51 = vadd.f32 %v994_v31, %v954_v49  ;;  %v2587_v23 = vadd.f32 %v1208_v48, %v1168_v29  ;;  %v750_v33 = vld [vmem:[#allocation2 + $0xf0] sm:$0xff] }
 0x1e6   : > { %v786_v42 = vld [vmem:[#allocation2 + $0xf1] sm:$0xff]  ;;  %v1011_v63 = vadd.f32 %v979_v38, %v939_v4  ;;  %v1225_v1 = vadd.f32 %v1193_v15, %v1153_v30  ;;  %v2590_v22 = vadd.f32 %v2440_v54, %v955_v7  ;;  %v2593_v6 = vadd.f32 %v2449_v18, %v1169_v16 }
 0x1e7   : > { %v909_v11 = vmul.f32 %v2466_v44, %v750_v33  ;;  %v2597_v55 = vmul.f32 %v2501_v53, %v786_v42  ;;  %v1123_v5 = vmul.f32 %v2508_v40, %v750_v33  ;;  %v2601_v31 = vmul.f32 %v2526_v12, %v786_v42  ;;  %v766_v35 = vld [vmem:[#allocation2 + $0x1f0] sm:$0xff]  ;;  %v713_v9 = vld [vmem:[#allocation2 + $0xe7] sm:$0xff] }
 0x1e8   : > { %v802_v10 = vld [vmem:[#allocation2 + $0x1f1] sm:$0xff]  ;;  %v1337_v32 = vmul.f32 %v2563_v13, %v750_v33  ;;  %v1409_v54 = vmul.f32 %v2578_v43, %v786_v42  ;;  %v925_v18 = vmul.f32 %v2466_v44, %v766_v35  ;;  %v749_v20 = vld [vmem:[#allocation2 + $0xe8] sm:$0xff]  ;;  %v1139_v34 = vmul.f32 %v2508_v40, %v766_v35 }
 0x1e9   : > { %v2607_v28 = vmul.f32 %v2501_v53, %v802_v10  ;;  %v714_v24 = vld [vmem:[#allocation2 + $0xef] sm:$0xff]  ;;  %v2611_v21 = vmul.f32 %v2526_v12, %v802_v10  ;;  %v2614_v49 = vmul.f32 %v2563_v13, %v766_v35  ;;  %v2617_v56 = vmul.f32 %v2578_v43, %v802_v10  ;;  %v729_v37 = vld [vmem:[#allocation2 + $0x1e7] sm:$0xff] }
 0x1ea   : > { %v785_v25 = vld [vmem:[#allocation2 + $0xe9] sm:$0xff]  ;;  %v836_v27 = vmul.f32 %v2417_v46, %v713_v9  ;;  %v837_v57 = vmul.f32 %v2417_v46, %v714_v24  ;;  %v908_v29 = vmul.f32 %v2466_v44, %v749_v20  ;;  %v1050_v2 = vmul.f32 %v2479_v19, %v713_v9 }
 0x1eb   : > { %v980_v48 = vmul.f32 %v2501_v53, %v785_v25  ;;  %v1051_v3 = vmul.f32 %v2479_v19, %v714_v24  ;;  %v1122_v50 = vmul.f32 %v2508_v40, %v749_v20  ;;  %v1194_v26 = vmul.f32 %v2526_v12, %v785_v25  ;;  %v730_v45 = vld [vmem:[#allocation2 + $0x1ef] sm:$0xff] }
 0x1ec   : > { %v868_v39 = vadd.f32 %v2457_v60, %v836_v27  ;;  %v869_v61 = vadd.f32 %v2457_v60, %v837_v57  ;;  %v1264_v8 = vmul.f32 %v2555_v14, %v713_v9  ;;  %v1265_v17 = vmul.f32 %v2555_v14, %v714_v24  ;;  %v765_v62 = vld [vmem:[#allocation2 + $0x1e8] sm:$0xff] }
 0x1ed   : > { %v1082_v4 = vadd.f32 %v1050_v2, %v1010_v36  ;;  %v1083_v30 = vadd.f32 %v1051_v3, %v1011_v63  ;;  %v1336_v7 = vmul.f32 %v2563_v13, %v749_v20  ;;  %v1408_v16 = vmul.f32 %v2578_v43, %v785_v25  ;;  %v801_v42 = vld [vmem:[#allocation2 + $0x1e9] sm:$0xff] }
 0x1ee   : > { %v940_v58 = vadd.f32 %v908_v29, %v868_v39  ;;  %v2633_v38 = vadd.f32 %v909_v11, %v869_v61  ;;  %v1296_v15 = vadd.f32 %v1264_v8, %v1224_v41  ;;  %v1297_v33 = vadd.f32 %v1265_v17, %v1225_v1  ;;  %v752_v2 = vld [vmem:[#allocation2 + $0x110] sm:$0xff] }
 0x1ef   : > { %v1154_v35 = vadd.f32 %v1122_v50, %v1082_v4  ;;  %v2635_v10 = vadd.f32 %v1123_v5, %v1083_v30  ;;  %v852_v9 = vmul.f32 %v2417_v46, %v729_v37  ;;  %v853_v24 = vmul.f32 %v2417_v46, %v730_v45  ;;  %v788_v17 = vld [vmem:[#allocation2 + $0x111] sm:$0xff] }
 0x1f0   : > { %v2639_v36 = vadd.f32 %v980_v48, %v940_v58  ;;  %v1368_v63 = vadd.f32 %v1336_v7, %v1296_v15  ;;  %v1369_v20 = vadd.f32 %v1337_v32, %v1297_v33  ;;  %v924_v25 = vmul.f32 %v2466_v44, %v765_v62  ;;  %v768_v15 = vld [vmem:[#allocation2 + $0x210] sm:$0xff] }
 0x1f1   : > { %v2642_v11 = vadd.f32 %v1194_v26, %v1154_v35  ;;  %v884_v41 = vadd.f32 %v2457_v60, %v852_v9  ;;  %v885_v1 = vadd.f32 %v2457_v60, %v853_v24  ;;  %v996_v5 = vmul.f32 %v2501_v53, %v801_v42  ;;  %v716_v9 = vld [vmem:[#allocation2 + $0x10f] sm:$0xff] }
 0x1f2   : > { %v1440_v27 = vadd.f32 %v1408_v16, %v1368_v63  ;;  %v1441_v57 = vadd.f32 %v1409_v54, %v1369_v20  ;;  %v1066_v29 = vmul.f32 %v2479_v19, %v729_v37  ;;  %v1067_v48 = vmul.f32 %v2479_v19, %v730_v45  ;;  %v787_v20 = vld [vmem:[#allocation2 + $0x109] sm:$0xff] }
 0x1f3   : > { %v956_v3 = vadd.f32 %v924_v25, %v884_v41  ;;  %v2649_v32 = vadd.f32 %v925_v18, %v885_v1  ;;  %v1138_v50 = vmul.f32 %v2508_v40, %v765_v62  ;;  %v1210_v26 = vmul.f32 %v2526_v12, %v801_v42 }
 0x1f4   : > { %1472 = vst.msk [vmem:[%s2051_s29 + $0x50] sm:$0xff] %vm624_vm1, %v1440_v27  ;;  %1473 = vst.msk [vmem:[%s2051_s29 + $0x58] sm:$0xff] %vm624_vm1, %v1441_v57  ;;  %v1098_v39 = vadd.f32 %v1066_v29, %v2585_v51  ;;  %v1099_v54 = vadd.f32 %v1067_v48, %v2590_v22  ;;  %v1280_v61 = vmul.f32 %v2555_v14, %v729_v37  ;;  %v804_v37 = vld [vmem:[#allocation2 + $0x211] sm:$0xff] }
 0x1f5   : > { %v1281_v8 = vmul.f32 %v2555_v14, %v730_v45  ;;  %v2661_v4 = vadd.f32 %v996_v5, %v956_v3  ;;  %v1352_v18 = vmul.f32 %v2563_v13, %v765_v62  ;;  %v1424_v30 = vmul.f32 %v2578_v43, %v801_v42  ;;  %v715_v42 = vld [vmem:[#allocation2 + $0x107] sm:$0xff] }
 0x1f6   : > { %v911_v7 = vmul.f32 %v2466_v44, %v752_v2  ;;  %v1170_v16 = vadd.f32 %v1138_v50, %v1098_v39  ;;  %v2666_v58 = vadd.f32 %v1139_v34, %v1099_v54  ;;  %v1312_v51 = vadd.f32 %v1280_v61, %v2587_v23 }
 0x1f7   : > { %v1313_v22 = vadd.f32 %v1281_v8, %v2593_v6  ;;  %v983_v45 = vmul.f32 %v2501_v53, %v788_v17  ;;  %v1125_v33 = vmul.f32 %v2508_v40, %v752_v2  ;;  %v1197_v35 = vmul.f32 %v2526_v12, %v788_v17  ;;  %v751_v6 = vld [vmem:[#allocation2 + $0x108] sm:$0xff] }
 0x1f8   : > { %v1339_v62 = vmul.f32 %v2563_v13, %v752_v2  ;;  %v2674_v24 = vadd.f32 %v1210_v26, %v1170_v16  ;;  %v1384_v34 = vadd.f32 %v1352_v18, %v1312_v51  ;;  %v1411_v23 = vmul.f32 %v2578_v43, %v788_v17  ;;  %v731_v18 = vld [vmem:[#allocation2 + $0x207] sm:$0xff] }
 0x1f9   : > { %v1385_v63 = vadd.f32 %v2614_v49, %v1313_v22  ;;  %v2679_v25 = vmul.f32 %v2508_v40, %v768_v15  ;;  %v2682_v41 = vmul.f32 %v2526_v12, %v804_v37  ;;  %v2685_v1 = vmul.f32 %v2563_v13, %v768_v15 }
 0x1fa   : > { %v2688_v5 = vmul.f32 %v2578_v43, %v804_v37  ;;  %v1456_v27 = vadd.f32 %v1424_v30, %v1384_v34  ;;  %v838_v57 = vmul.f32 %v2417_v46, %v715_v42  ;;  %v839_v29 = vmul.f32 %v2417_v46, %v716_v9  ;;  %v2805_v34 = vld [vmem:[#allocation7_spill] sm:$0xff] }
 0x1fb   : > { %v1457_v49 = vadd.f32 %v2617_v56, %v1385_v63  ;;  %v910_v48 = vmul.f32 %v2466_v44, %v751_v6  ;;  %v982_v2 = vmul.f32 %v2501_v53, %v787_v20  ;;  %v1013_v3 = vadd.f32 %v2597_v55, %v2633_v38 }
 0x1fc   : > { %v1052_v50 = vmul.f32 %v2479_v19, %v715_v42  ;;  %1488 = vst.msk [vmem:[%s2051_s29 + $0xd0] sm:$0xff] %vm624_vm1, %v1456_v27  ;;  %v870_v26 = vadd.f32 %v2457_v60, %v838_v57  ;;  %v871_v56 = vadd.f32 %v2457_v60, %v839_v29  ;;  %v1053_v39 = vmul.f32 %v2479_v19, %v716_v9  ;;  %v803_v57 = vld [vmem:[#allocation2 + $0x209] sm:$0xff] }
 0x1fd   : > { %1489 = vst.msk [vmem:[%s2051_s29 + $0xd8] sm:$0xff] %vm624_vm1, %v1457_v49  ;;  %v1124_v46 = vmul.f32 %v2508_v40, %v751_v6  ;;  %v1196_v53 = vmul.f32 %v2526_v12, %v787_v20  ;;  %v1227_v55 = vadd.f32 %v2601_v31, %v2635_v10  ;;  %v1266_v38 = vmul.f32 %v2555_v14, %v715_v42  ;;  %v732_v31 = vld [vmem:[#allocation2 + $0x20f] sm:$0xff] }
 0x1fe   : > { %v1084_v44 = vadd.f32 %v1052_v50, %v2639_v36  ;;  %v942_v54 = vadd.f32 %v910_v48, %v870_v26  ;;  %v943_v61 = vadd.f32 %v911_v7, %v871_v56  ;;  %v1085_v8 = vadd.f32 %v1053_v39, %v1013_v3  ;;  %v2809_v3 = vld [vmem:[#allocation3_spill] sm:$0xff]  ;;  %v2810_v26 = vld [vmem:[#allocation12_spill] sm:$0xff] }
 0x1ff   : > { %v1267_v17 = vmul.f32 %v2555_v14, %v716_v9  ;;  %v1298_v30 = vadd.f32 %v1266_v38, %v2642_v11  ;;  %v1338_v16 = vmul.f32 %v2563_v13, %v751_v6  ;;  %v1410_v36 = vmul.f32 %v2578_v43, %v787_v20  ;;  %v2806_v11 = vld [vmem:[#allocation8_spill] sm:$0xff] }
 0x200   : > { %v1156_v60 = vadd.f32 %v1124_v46, %v1084_v44  ;;  %v1014_v51 = vadd.f32 %v982_v2, %v942_v54  ;;  %v1015_v22 = vadd.f32 %v983_v45, %v943_v61  ;;  %v1157_v15 = vadd.f32 %v1125_v33, %v1085_v8  ;;  %v767_v20 = vld [vmem:[#allocation2 + $0x208] sm:$0xff]  ;;  %v2807_v45 = vld [vmem:[#allocation11_spill] sm:$0xff]  ;;  %v2811_v46 = vld [vmem:[#allocation13_spill] sm:$0xff] }
 0x201   : > { %v1299_v37 = vadd.f32 %v1267_v17, %v1227_v55  ;;  %v1370_v42 = vadd.f32 %v1338_v16, %v1298_v30  ;;  %v1029_v7 = vadd.f32 %v2607_v28, %v2649_v32  ;;  %v1068_v9 = vmul.f32 %v2479_v19, %v731_v18  ;;  %v2808_v28 = vld [vmem:[#allocation9_spill] sm:$0xff]  ;;  %v2815_v8 = vld [vmem:[#allocation14_spill] sm:$0xff] }
 0x202   : > { %v1228_v10 = vadd.f32 %v1196_v53, %v1156_v60  ;;  %v1086_v63 = vadd.f32 %v2805_v34, %v1014_v51  ;;  %v1087_v27 = vadd.f32 %v2806_v11, %v1015_v22  ;;  %v1229_v6 = vadd.f32 %v1197_v35, %v1157_v15  ;;  %v2814_v54 = vld [vmem:[#allocation5_spill] sm:$0xff]  ;;  %v2818_v22 = vld [vmem:[#allocation6_spill] sm:$0xff] }
 0x203   : > { %v1371_v49 = vadd.f32 %v1339_v62, %v1299_v37  ;;  %v1442_v29 = vadd.f32 %v1410_v36, %v1370_v42  ;;  %v1069_v48 = vmul.f32 %v2479_v19, %v732_v31  ;;  %v1100_v2 = vadd.f32 %v1068_v9, %v2661_v4  ;;  %v2812_v19 = vld [vmem:[#allocation10_spill] sm:$0xff]  ;;  %v2813_v4 = vld [vmem:[#allocation4_spill] sm:$0xff]  ;;  %v2820_v9 = vld [vmem:[#allocation15_spill] sm:$0xff] }
 0x204   : > { %v1300_v33 = vadd.f32 %v2807_v45, %v1228_v10  ;;  %v1158_v32 = vadd.f32 %v2808_v28, %v1086_v63  ;;  %v1159_v50 = vadd.f32 %v2809_v3, %v1087_v27  ;;  %v1301_v56 = vadd.f32 %v2810_v26, %v1229_v6  ;;  %v2817_v36 = vld [vmem:[#allocation18_spill] sm:$0xff]  ;;  %v2822_v27 = vld [vmem:[#allocation20_spill] sm:$0xff] }
 0x205   : > { %v1443_v39 = vadd.f32 %v1411_v23, %v1371_v49  ;;  %1474 = vst.msk [vmem:[%s2051_s29 + $0x60] sm:$0xff] %vm624_vm1, %v1442_v29  ;;  %v1101_v62 = vadd.f32 %v1069_v48, %v1029_v7  ;;  %v1140_v44 = vmul.f32 %v2508_v40, %v767_v20  ;;  %v1212_v53 = vmul.f32 %v2526_v12, %v803_v57  ;;  %v2816_v12 = vld [vmem:[#allocation17_spill] sm:$0xff]  ;;  %v2819_v7 = vld [vmem:[#allocation19_spill] sm:$0xff]  ;;  %v2823_v49 = vld [vmem:[#allocation16_spill] sm:$0xff] }
 0x206   : > { %v1372_v35 = vadd.f32 %v2811_v46, %v1300_v33  ;;  %v1230_v55 = vadd.f32 %v2812_v19, %v1158_v32  ;;  %v1231_v38 = vadd.f32 %v2813_v4, %v1159_v50  ;;  %v1373_v61 = vadd.f32 %v2814_v54, %v1301_v56  ;;  %v806_v37 = vld [vmem:[#allocation2 + $0x231] sm:$0xff] }
 0x207   : > { %1475 = vst.msk [vmem:[%s2051_s29 + $0x68] sm:$0xff] %vm624_vm1, %v1443_v39  ;;  %v1243_v23 = vadd.f32 %v2611_v21, %v2666_v58  ;;  %v1172_v60 = vadd.f32 %v1140_v44, %v1100_v2  ;;  %v1173_v40 = vadd.f32 %v2679_v25, %v1101_v62  ;;  %v1282_v30 = vmul.f32 %v2555_v14, %v731_v18 }
 0x208   : > { %v1444_v17 = vadd.f32 %v2815_v8, %v1372_v35  ;;  %v1302_v16 = vadd.f32 %v2816_v12, %v1230_v55  ;;  %v1303_v51 = vadd.f32 %v2817_v36, %v1231_v38  ;;  %v1445_v15 = vadd.f32 %v2818_v22, %v1373_v61 }
 0x209   : > { %v1283_v10 = vmul.f32 %v2555_v14, %v732_v31  ;;  %v1244_v21 = vadd.f32 %v1212_v53, %v1172_v60  ;;  %v1245_v58 = vadd.f32 %v2682_v41, %v1173_v40  ;;  %v1314_v42 = vadd.f32 %v1282_v30, %v2674_v24  ;;  %v2821_v31 = vld [vmem:[#allocation21_spill] sm:$0xff] }
 0x20a   : > { %1476 = vst.msk [vmem:[%s2051_s29 + $0x70] sm:$0xff] %vm624_vm1, %v1444_v17  ;;  %v1354_v25 = vmul.f32 %v2563_v13, %v767_v20  ;;  %v1374_v18 = vadd.f32 %v2819_v7, %v1302_v16  ;;  %v1375_v34 = vadd.f32 %v2820_v9, %v1303_v51  ;;  %1477 = vst.msk [vmem:[%s2051_s29 + $0x78] sm:$0xff] %vm624_vm1, %v1445_v15 }
 0x20b   : > { %v1315_v63 = vadd.f32 %v1283_v10, %v1243_v23  ;;  %v1426_v14 = vmul.f32 %v2578_v43, %v803_v57  ;;  %v1316_v11 = vadd.f32 %v2821_v31, %v1244_v21  ;;  %v1317_v41 = vadd.f32 %v2558_v0, %v1245_v58 }
 0x20c   : > { %v1386_v24 = vadd.f32 %v1354_v25, %v1314_v42  ;;  %v1429_v13 = vmul.f32 %v2578_v43, %v806_v37  ;;  %v1446_v6 = vadd.f32 %v2822_v27, %v1374_v18  ;;  %v1447_v20 = vadd.f32 %v2823_v49, %v1375_v34 }
 0x20d   : > { %v1387_v45 = vadd.f32 %v2685_v1, %v1315_v63  ;;  %v1388_v33 = vadd.f32 %v2566_v47, %v1316_v11  ;;  %v1389_v57 = vadd.f32 %v2573_v59, %v1317_v41 }
 0x20e   : > { %v1458_v29 = vadd.f32 %v1426_v14, %v1386_v24  ;;  %1478 = vst.msk [vmem:[%s2051_s29 + $0x80] sm:$0xff] %vm624_vm1, %v1446_v6  ;;  %1479 = vst.msk [vmem:[%s2051_s29 + $0x88] sm:$0xff] %vm624_vm1, %v1447_v20 }
 0x20f   : > { %v1459_v0 = vadd.f32 %v2688_v5, %v1387_v45  ;;  %v1460_v48 = vadd.f32 %v2581_v52, %v1388_v33  ;;  %v1461_v43 = vadd.f32 %v1429_v13, %v1389_v57 }
 0x210   : > { %1490 = vst.msk [vmem:[%s2051_s29 + $0xe0] sm:$0xff] %vm624_vm1, %v1458_v29 }
 0x211   : > { %1491 = vst.msk [vmem:[%s2051_s29 + $0xe8] sm:$0xff] %vm624_vm1, %v1459_v0  ;;  %1492 = vst.msk [vmem:[%s2051_s29 + $0xf0] sm:$0xff] %vm624_vm1, %v1460_v48 }
 0x212   : > { %1493 = vst.msk [vmem:[%s2051_s29 + $0xf8] sm:$0xff] %vm624_vm1, %v1461_v43 }
 0x213 PF: > { %s15_s18 = sadd.s32 1, %s1731_s18  }
 0x214   : > { %p12_p4 = scmp.ge.s32.totalorder %s15_s18, 4  }
 0x216   :  { %14 = sbr.rel (!%p12_p4) target bundleno = 1 (0x1), region = 80 }

// kernel: attention_forward.3
= control target key start
LH: loop header
LB: loop body
LE: loop exit
PB: predicated region body
PF: predicated region fallthrough
CT: control target
= control target key end

     0   :  { %s1701_s18 = smov 0   ;;  %s2213_s0 = inlined_call_operand.vmem [shape: f32[2,256,48], index: 0, kind: input, shape index: {}]   ;;  %s2214_s1 = inlined_call_operand.vmem [shape: f32[1,16], index: 1, kind: input, shape index: {}]   ;;  %s2215_s2 = inlined_call_operand.vmem [shape: f32[16,16], index: 2, kind: input, shape index: {}]   ;;  %s2216_s3 = inlined_call_operand.vmem [shape: f32[16,16], index: 3, kind: input, shape index: {}]   ;;  %s2217_s4 = inlined_call_operand.vmem [shape: f32[16,1], index: 4, kind: input, shape index: {}]   ;;  %s2218_s5 = inlined_call_operand.vmem [shape: f32[2,16,256], index: 5, kind: output, shape index: {}]  }
   0x1 LB: > { %s1225_s19 = sadd.s32 4294967295, %s1665_s18   ;;  %p1229_p0 = scmp.ge.s32.totalorder %s1665_s18, 1  ;;  %s1665_s18 = sphi %s1701_s18, %s15_s18  }
   0x2   : > { %p187_p1 = scmp.lt.s32.totalorder %s1665_s18, 3 }
   0x4   : > { %p188_p2 = pnand %p1229_p0, %p187_p1 }
   0x5   : > { %p215_p3 = scmp.lt.s32.totalorder (!%p188_p2), %s1225_s19, 1  ;;  %vm361_vm0 = vcmask (!%p188_p2), 261248   ;;  %vm289_vm1 = vcmask (!%p188_p2), 130048   ;;  %s1667_s24 = smov (!%p188_p2), 112  }
   0x6   : > { %191 = sbr.rel (%p188_p2) target bundleno = 1282 (0x502), region = 40  ;;  %s1668_s27 = smov (!%p188_p2), 96   ;;  %vm2118_vm2 = vmpackc.low (!%p188_p2), %vm289_vm1, %vm289_vm1 }
   0xd   : > { %s2222_s19 = smov (!%p215_p3, %s1225_s19), 1 }
   0xe   : > { %s1272_s20 = sshll.u32 %s2222_s19, 8  ;;  %s1273_s15 = sshll.u32 %s2222_s19, 5 }
   0xf   : > { %s1715_s23 = scalar_lea.vmem %s2213_s0, %s1272_s20  ;;  %s224_s20 = scalar_lea.vmem %s2218_s5, %s1273_s15 }
  0x10   : > { %v1718_v0 = vld [vmem:[%s1715_s23] sm:$0xff]  ;;  %v1721_v1 = vld [vmem:[%s1715_s23 + $0x8] sm:$0xff]  ;;  %v1724_v2 = vld [vmem:[%s1715_s23 + $0x10] sm:$0xff] }
  0x11   : > { %v1727_v3 = vld [vmem:[%s1715_s23 + $0x18] sm:$0xff]  ;;  %v257_v4 = vmul.f32 %v1718_v0, %v1718_v0  ;;  %v258_v5 = vmul.f32 %v1721_v1, %v1721_v1  ;;  %v259_v6 = vmul.f32 %v1724_v2, %v1724_v2  ;;  %v1736_v7 = vld [vmem:[%s1715_s23 + $0x20] sm:$0xff]  ;;  %v1741_v9 = vld [vmem:[%s1715_s23 + $0x28] sm:$0xff] }
  0x12   : > { %v260_v8 = vmul.f32 %v1727_v3, %v1727_v3  ;;  %v261_v10 = vmul.f32 %v1736_v7, %v1736_v7  ;;  %v1749_v14 = vld [vmem:[%s1715_s23 + $0x30] sm:$0xff]  ;;  %v262_v16 = vmul.f32 %v1741_v9, %v1741_v9  ;;  %v1755_v18 = vld [vmem:[%s1715_s23 + $0x38] sm:$0xff]  ;;  %v1761_v22 = vld [vmem:[%s1715_s23 + $0x40] sm:$0xff] }
  0x13   : > { %v362_v11 = vsel %vm361_vm0, %v257_v4, 0.0  ;;  %v363_v12 = vsel %vm361_vm0, %v258_v5, 0.0  ;;  %v365_v13 = vsel %vm361_vm0, %v259_v6, 0.0  ;;  %v263_v20 = vmul.f32 %v1749_v14, %v1749_v14  ;;  %v1767_v26 = vld [vmem:[%s1715_s23 + $0x48] sm:$0xff]  ;;  %v1774_v31 = vld [vmem:[%s1715_s23 + $0x50] sm:$0xff]  ;;  %v1782_v38 = vld [vmem:[%s1715_s23 + $0x58] sm:$0xff] }
  0x14   : > { %v364_v15 = vadd.f32 %v363_v12, %v362_v11  ;;  %v367_v17 = vsel %vm361_vm0, %v260_v8, 0.0  ;;  %v369_v21 = vsel %vm361_vm0, %v261_v10, 0.0  ;;  %v264_v24 = vmul.f32 %v1755_v18, %v1755_v18  ;;  %v1789_v44 = vld [vmem:[%s1715_s23 + $0x60] sm:$0xff]  ;;  %v1796_v50 = vld [vmem:[%s1715_s23 + $0x68] sm:$0xff]  ;;  %v1803_v56 = vld [vmem:[%s1715_s23 + $0x70] sm:$0xff] }
  0x15   : > { %v371_v25 = vsel %vm361_vm0, %v262_v16, 0.0  ;;  %v291_v27 = vsel %vm289_vm1, %v258_v5, 0.0  ;;  %v265_v29 = vmul.f32 %v1761_v22, %v1761_v22  ;;  %v373_v30 = vsel %vm361_vm0, %v263_v20, 0.0  ;;  %v1810_v62 = vld [vmem:[%s1715_s23 + $0x78] sm:$0xff] }
  0x16   : > { %v366_v19 = vadd.f32 %v365_v13, %v364_v15  ;;  %v293_v32 = vsel %vm289_vm1, %v259_v6, 0.0  ;;  %v290_v34 = vsel %vm289_vm1, %v257_v4, 0.0  ;;  %v266_v35 = vmul.f32 %v1767_v26, %v1767_v26 }
  0x17   : > { %v375_v36 = vsel %vm361_vm0, %v264_v24, 0.0  ;;  %v292_v37 = vadd.f32 %v291_v27, %v290_v34  ;;  %v295_v39 = vsel %vm289_vm1, %v260_v8, 0.0  ;;  %v267_v41 = vmul.f32 %v1774_v31, %v1774_v31 }
  0x18   : > { %v368_v23 = vadd.f32 %v367_v17, %v366_v19  ;;  %v377_v42 = vsel %vm361_vm0, %v265_v29, 0.0  ;;  %v297_v45 = vsel %vm289_vm1, %v261_v10, 0.0  ;;  %v268_v47 = vmul.f32 %v1782_v38, %v1782_v38  ;;  %v1817_v10 = vld [vmem:[%s1715_s23 + $0x80] sm:$0xff]  ;;  %v1824_v17 = vld [vmem:[%s1715_s23 + $0x88] sm:$0xff] }
  0x19   : > { %v294_v43 = vadd.f32 %v293_v32, %v292_v37  ;;  %v379_v48 = vsel %vm361_vm0, %v266_v35, 0.0  ;;  %v299_v51 = vsel %vm289_vm1, %v262_v16, 0.0  ;;  %v269_v53 = vmul.f32 %v1789_v44, %v1789_v44 }
  0x1a   : > { %v370_v28 = vadd.f32 %v369_v21, %v368_v23  ;;  %v381_v54 = vsel %vm361_vm0, %v267_v41, 0.0  ;;  %v301_v57 = vsel %vm289_vm1, %v263_v20, 0.0  ;;  %v270_v59 = vmul.f32 %v1796_v50, %v1796_v50 }
  0x1b   : > { %v296_v49 = vadd.f32 %v295_v39, %v294_v43  ;;  %v383_v60 = vsel %vm361_vm0, %v268_v47, 0.0  ;;  %v303_v63 = vsel %vm289_vm1, %v264_v24, 0.0  ;;  %v271_v5 = vmul.f32 %v1803_v56, %v1803_v56 }
  0x1c   : > { %v372_v33 = vadd.f32 %v371_v25, %v370_v28  ;;  %v385_v6 = vsel %vm361_vm0, %v269_v53, 0.0  ;;  %v305_v11 = vsel %vm289_vm1, %v265_v29, 0.0  ;;  %v272_v13 = vmul.f32 %v1810_v62, %v1810_v62  ;;  %v1831_v25 = vld [vmem:[%s1715_s23 + $0x90] sm:$0xff] }
  0x1d   : > { %v298_v55 = vadd.f32 %v297_v45, %v296_v49  ;;  %v387_v15 = vsel %vm361_vm0, %v270_v59, 0.0  ;;  %v307_v19 = vsel %vm289_vm1, %v266_v35, 0.0  ;;  %v273_v21 = vmul.f32 %v1817_v10, %v1817_v10 }
  0x1e   : > { %v374_v40 = vadd.f32 %v373_v30, %v372_v33  ;;  %v389_v23 = vsel %vm361_vm0, %v271_v5, 0.0  ;;  %v309_v27 = vsel %vm289_vm1, %v267_v41, 0.0  ;;  %v274_v29 = vmul.f32 %v1824_v17, %v1824_v17  ;;  %v1838_v33 = vld [vmem:[%s1715_s23 + $0x98] sm:$0xff] }
  0x1f   : > { %v300_v61 = vadd.f32 %v299_v51, %v298_v55  ;;  %v391_v30 = vsel %vm361_vm0, %v272_v13, 0.0  ;;  %v311_v34 = vsel %vm289_vm1, %v268_v47, 0.0  ;;  %v393_v37 = vsel %vm361_vm0, %v273_v21, 0.0  ;;  %v1852_v47 = vld [vmem:[%s1715_s23 + $0xa8] sm:$0xff] }
  0x20   : > { %v376_v46 = vadd.f32 %v375_v36, %v374_v40  ;;  %v275_v36 = vmul.f32 %v1831_v25, %v1831_v25  ;;  %v1845_v40 = vld [vmem:[%s1715_s23 + $0xa0] sm:$0xff]  ;;  %v313_v41 = vsel %vm289_vm1, %v269_v53, 0.0  ;;  %v276_v43 = vmul.f32 %v1838_v33, %v1838_v33 }
  0x21   : > { %v302_v8 = vadd.f32 %v301_v57, %v300_v61  ;;  %v395_v45 = vsel %vm361_vm0, %v274_v29, 0.0  ;;  %v277_v51 = vmul.f32 %v1845_v40, %v1845_v40  ;;  %v317_v55 = vsel %vm289_vm1, %v271_v5, 0.0  ;;  %v1866_v61 = vld [vmem:[%s1715_s23 + $0xb8] sm:$0xff] }
  0x22   : > { %v378_v52 = vadd.f32 %v377_v42, %v376_v46 }
  0x23   : > { %v304_v16 = vadd.f32 %v303_v63, %v302_v8  ;;  %v319_v63 = vsel %vm289_vm1, %v272_v13, 0.0  ;;  %v401_v8 = vsel %vm361_vm0, %v277_v51, 0.0 }
  0x24   : > { %v380_v58 = vadd.f32 %v379_v48, %v378_v52  ;;  %v315_v48 = vsel %vm289_vm1, %v270_v59, 0.0  ;;  %v397_v52 = vsel %vm361_vm0, %v275_v36, 0.0 }
  0x25   : > { %v306_v24 = vadd.f32 %v305_v11, %v304_v16  ;;  %v1873_v11 = vld [vmem:[%s1715_s23 + $0xc0] sm:$0xff]  ;;  %v280_v16 = vmul.f32 %v1866_v61, %v1866_v61 }
  0x26   : > { %v382_v4 = vadd.f32 %v381_v54, %v380_v58  ;;  %v1859_v54 = vld [vmem:[%s1715_s23 + $0xb0] sm:$0xff]  ;;  %v278_v58 = vmul.f32 %v1852_v47, %v1852_v47 }
  0x27   : > { %v308_v32 = vadd.f32 %v307_v19, %v306_v24 }
  0x28   : > { %v384_v12 = vadd.f32 %v383_v60, %v382_v4  ;;  %v399_v60 = vsel %vm361_vm0, %v276_v43, 0.0  ;;  %v403_v19 = vsel %vm361_vm0, %v278_v58, 0.0 }
  0x29   : > { %v310_v39 = vadd.f32 %v309_v27, %v308_v32  ;;  %v281_v27 = vmul.f32 %v1873_v11, %v1873_v11  ;;  %v325_v32 = vsel %vm289_vm1, %v275_v36, 0.0 }
  0x2a   : > { %v386_v20 = vadd.f32 %v385_v6, %v384_v12  ;;  %v279_v6 = vmul.f32 %v1859_v54, %v1859_v54  ;;  %v321_v12 = vsel %vm289_vm1, %v273_v21, 0.0 }
  0x2b   : > { %v312_v46 = vadd.f32 %v311_v34, %v310_v39  ;;  %v1894_v39 = vld [vmem:[%s1715_s23 + $0xd8] sm:$0xff] }
  0x2c   : > { %v388_v28 = vadd.f32 %v387_v15, %v386_v20  ;;  %v1880_v20 = vld [vmem:[%s1715_s23 + $0xc8] sm:$0xff] }
  0x2d   : > { %v314_v53 = vadd.f32 %v313_v41, %v312_v46  ;;  %v327_v41 = vsel %vm289_vm1, %v276_v43, 0.0  ;;  %v409_v46 = vsel %vm361_vm0, %v281_v27, 0.0 }
  0x2e   : > { %v390_v35 = vadd.f32 %v389_v23, %v388_v28  ;;  %v323_v23 = vsel %vm289_vm1, %v274_v29, 0.0  ;;  %v405_v28 = vsel %vm361_vm0, %v279_v6, 0.0 }
  0x2f   : > { %v316_v59 = vadd.f32 %v315_v48, %v314_v53  ;;  %v1901_v48 = vld [vmem:[%s1715_s23 + $0xe0] sm:$0xff]  ;;  %v284_v53 = vmul.f32 %v1894_v39, %v1894_v39 }
  0x30   : > { %v392_v42 = vadd.f32 %v391_v30, %v390_v35  ;;  %v1887_v30 = vld [vmem:[%s1715_s23 + $0xd0] sm:$0xff]  ;;  %v282_v35 = vmul.f32 %v1880_v20, %v1880_v20 }
  0x31   : > { %v318_v5 = vadd.f32 %v317_v55, %v316_v59 }
  0x32   : > { %v394_v49 = vadd.f32 %v393_v37, %v392_v42  ;;  %v407_v37 = vsel %vm361_vm0, %v280_v16, 0.0  ;;  %v411_v55 = vsel %vm361_vm0, %v282_v35, 0.0 }
  0x33   : > { %v320_v13 = vadd.f32 %v319_v63, %v318_v5  ;;  %v285_v63 = vmul.f32 %v1901_v48, %v1901_v48  ;;  %v333_v5 = vsel %vm289_vm1, %v279_v6, 0.0 }
  0x34   : > { %v396_v57 = vadd.f32 %v395_v45, %v394_v49  ;;  %v283_v45 = vmul.f32 %v1887_v30, %v1887_v30  ;;  %v329_v49 = vsel %vm289_vm1, %v277_v51, 0.0  ;;  %v1915_v51 = vld [vmem:[%s1715_s23 + $0xf0] sm:$0xff] }
  0x35   : > { %v322_v21 = vadd.f32 %v321_v12, %v320_v13 }
  0x36   : > { %v398_v4 = vadd.f32 %v397_v52, %v396_v57  ;;  %v1908_v57 = vld [vmem:[%s1715_s23 + $0xe8] sm:$0xff] }
  0x37   : > { %v324_v29 = vadd.f32 %v323_v23, %v322_v21  ;;  %v1922_v23 = vld [vmem:[%s1715_s23 + $0xf8] sm:$0xff]  ;;  %v417_v21 = vsel %vm361_vm0, %v285_v63, 0.0 }
  0x38   : > { %v400_v15 = vadd.f32 %v399_v60, %v398_v4  ;;  %v331_v60 = vsel %vm289_vm1, %v278_v58, 0.0  ;;  %v413_v4 = vsel %vm361_vm0, %v283_v45, 0.0  ;;  %v288_v6 = vmul.f32 %v1922_v23, %v1922_v23 }
  0x39   : > { %v326_v36 = vadd.f32 %v325_v32, %v324_v29 }
  0x3a   : > { %v402_v24 = vadd.f32 %v401_v8, %v400_v15  ;;  %v286_v15 = vmul.f32 %v1908_v57, %v1908_v57 }
  0x3b   : > { %v328_v43 = vadd.f32 %v327_v41, %v326_v36 }
  0x3c   : > { %v404_v34 = vadd.f32 %v403_v19, %v402_v24  ;;  %v415_v19 = vsel %vm361_vm0, %v284_v53, 0.0  ;;  %v287_v24 = vmul.f32 %v1915_v51, %v1915_v51 }
  0x3d   : > { %v330_v8 = vadd.f32 %v329_v49, %v328_v43  ;;  %v423_v49 = vsel %vm361_vm0, %v288_v6, 0.0 }
  0x3e   : > { %v406_v42 = vadd.f32 %v405_v28, %v404_v34  ;;  %v335_v28 = vsel %vm289_vm1, %v280_v16, 0.0 }
  0x3f   : > { %v332_v13 = vadd.f32 %v331_v60, %v330_v8 }
  0x40   : > { %v408_v52 = vadd.f32 %v407_v37, %v406_v42  ;;  %v419_v37 = vsel %vm361_vm0, %v286_v15, 0.0  ;;  %v337_v42 = vsel %vm289_vm1, %v281_v27, 0.0 }
  0x41   : > { %v334_v32 = vadd.f32 %v333_v5, %v332_v13 }
  0x42   : > { %v410_v59 = vadd.f32 %v409_v46, %v408_v52  ;;  %v421_v46 = vsel %vm361_vm0, %v287_v24, 0.0 }
  0x43   : > { %v336_v41 = vadd.f32 %v335_v28, %v334_v32  ;;  %v345_v28 = vsel %vm289_vm1, %v285_v63, 0.0 }
  0x44   : > { %v412_v12 = vadd.f32 %v411_v55, %v410_v59  ;;  %v339_v55 = vsel %vm289_vm1, %v282_v35, 0.0  ;;  %v347_v35 = vsel %vm289_vm1, %v286_v15, 0.0 }
  0x45   : > { %v338_v16 = vadd.f32 %v337_v42, %v336_v41  ;;  %v351_v41 = vsel %vm289_vm1, %v288_v6, 0.0 }
  0x46   : > { %v414_v58 = vadd.f32 %v413_v4, %v412_v12  ;;  %v341_v4 = vsel %vm289_vm1, %v283_v45, 0.0 }
  0x47   : > { %v340_v59 = vadd.f32 %v339_v55, %v338_v16 }
  0x48   : > { %v416_v34 = vadd.f32 %v415_v19, %v414_v58  ;;  %v343_v19 = vsel %vm289_vm1, %v284_v53, 0.0 }
  0x49   : > { %v342_v12 = vadd.f32 %v341_v4, %v340_v59 }
  0x4a   : > { %v418_v29 = vadd.f32 %v417_v21, %v416_v34 }
  0x4b   : > { %v344_v58 = vadd.f32 %v343_v19, %v342_v12 }
  0x4c   : > { %v420_v36 = vadd.f32 %v419_v37, %v418_v29  ;;  %v349_v29 = vsel %vm289_vm1, %v287_v24, 0.0 }
  0x4d   : > { %v346_v34 = vadd.f32 %v345_v28, %v344_v58 }
  0x4e   : > { %v422_v52 = vadd.f32 %v421_v46, %v420_v36 }
  0x4f   : > { %v348_v37 = vadd.f32 %v347_v35, %v346_v34 }
  0x50   : > { %v424_v43 = vadd.f32 %v423_v49, %v422_v52 }
  0x51   : > { %v350_v45 = vadd.f32 %v349_v29, %v348_v37 }
  0x52   : > { %v425_v60 = vrot.slane %v424_v43, 4 }
  0x53   : > { %v352_v53 = vadd.f32 %v351_v41, %v350_v45 }
  0x54   : > { %v426_v8 = vadd.f32 %v425_v60, %v424_v43 }
  0x55   : > { %v353_v12 = vrot.slane %v352_v53, 4 }
  0x56   : > { %v427_v5 = vrot.slane %v426_v8, 2 }
  0x58   : > { %v428_v27 = vadd.f32 %v427_v5, %v426_v8 }
  0x5a   : > { %v429_v13 = vrot.slane %v428_v27, 1 }
  0x5c   : > { %v430_v21 = vadd.f32 %v429_v13, %v428_v27 }
  0x5e   : > { %v431_v32 = vmax.f32 %v430_v21, 1e-24 }
  0x60   : > { %1647 = vrsqrt.f32 %v431_v32  ;;  %v354_v32 = vadd.f32 %v353_v12, %v352_v53 }
  0x6a   : > { %v1941_v42 = vpop.eup %1647 }
  0x6b   : > { %v487_v46 = vmul.f32 %v1941_v42, %v1817_v10  ;;  %v488_v63 = vmul.f32 %v1941_v42, %v1824_v17  ;;  %v489_v36 = vmul.f32 %v1941_v42, %v1831_v25  ;;  %v490_v15 = vmul.f32 %v1941_v42, %v1838_v33 }
  0x6c   : > { %v471_v24 = vmul.f32 %v1941_v42, %v1718_v0  ;;  %v472_v6 = vmul.f32 %v1941_v42, %v1721_v1  ;;  %v473_v49 = vmul.f32 %v1941_v42, %v1724_v2  ;;  %v474_v52 = vmul.f32 %v1941_v42, %v1727_v3 }
  0x6d   : > { %v1444_v16 = vpack.i.bf16 %v488_v63, %v487_v46  ;;  %v1454_v55 = vpack.i.bf16 %v490_v15, %v489_v36  ;;  %v491_v60 = vmul.f32 %v1941_v42, %v1845_v40  ;;  %v492_v59 = vmul.f32 %v1941_v42, %v1852_v47 }
  0x6e   : > { %v1449_v43 = vpack.i.bf16 %v472_v6, %v471_v24  ;;  %v1459_v4 = vpack.i.bf16 %v474_v52, %v473_v49  ;;  %v475_v8 = vmul.f32 %v1941_v42, %v1736_v7  ;;  %v476_v5 = vmul.f32 %v1941_v42, %v1741_v9 }
  0x6f   : > { %1445 = vrot.lane.b32.xlu0 %v1444_v16, %s1667_s24  ;;  %1455 = vrot.lane.b32.xlu1 %v1454_v55, %s1667_s24  ;;  %v1464_v19 = vpack.i.bf16 %v492_v59, %v491_v60  ;;  %v493_v27 = vmul.f32 %v1941_v42, %v1859_v54  ;;  %v494_v13 = vmul.f32 %v1941_v42, %v1866_v61  ;;  %v355_v46 = vrot.slane %v354_v32, 2 }
  0x70   : > { %v1469_v58 = vpack.i.bf16 %v476_v5, %v475_v8  ;;  %v477_v28 = vmul.f32 %v1941_v42, %v1749_v14  ;;  %v478_v21 = vmul.f32 %v1941_v42, %v1755_v18  ;;  %v495_v35 = vmul.f32 %v1941_v42, %v1873_v11 }
  0x71   : > { %v1474_v34 = vpack.i.bf16 %v494_v13, %v493_v27  ;;  %v496_v37 = vmul.f32 %v1941_v42, %v1880_v20  ;;  %v479_v45 = vmul.f32 %v1941_v42, %v1761_v22  ;;  %v480_v41 = vmul.f32 %v1941_v42, %v1767_v26 }
  0x72   : > { %v1479_v29 = vpack.i.bf16 %v478_v21, %v477_v28  ;;  %v497_v53 = vmul.f32 %v1941_v42, %v1887_v30  ;;  %v498_v63 = vmul.f32 %v1941_v42, %v1894_v39  ;;  %v481_v36 = vmul.f32 %v1941_v42, %v1774_v31 }
  0x73   : > { %1450 = vrot.lane.b32.xlu0 %v1449_v43, %s1667_s24  ;;  %1460 = vrot.lane.b32.xlu1 %v1459_v4, %s1667_s24  ;;  %v1484_v15 = vpack.i.bf16 %v496_v37, %v495_v35  ;;  %v1489_v24 = vpack.i.bf16 %v480_v41, %v479_v45  ;;  %v482_v6 = vmul.f32 %v1941_v42, %v1782_v38 }
  0x74   : > { %v356_v49 = vadd.f32 %v355_v46, %v354_v32  ;;  %v1494_v52 = vpack.i.bf16 %v498_v63, %v497_v53  ;;  %v499_v16 = vmul.f32 %v1941_v42, %v1901_v48  ;;  %v500_v55 = vmul.f32 %v1941_v42, %v1908_v57 }
  0x75   : > { %v1499_v43 = vpack.i.bf16 %v482_v6, %v481_v36  ;;  %v483_v60 = vmul.f32 %v1941_v42, %v1789_v44  ;;  %v484_v59 = vmul.f32 %v1941_v42, %v1796_v50  ;;  %v501_v5 = vmul.f32 %v1941_v42, %v1915_v51 }
  0x76   : > { %v357_v4 = vrot.slane %v356_v49, 1  ;;  %v1504_v8 = vpack.i.bf16 %v500_v55, %v499_v16  ;;  %v502_v12 = vmul.f32 %v1941_v42, %v1922_v23  ;;  %v485_v27 = vmul.f32 %v1941_v42, %v1803_v56 }
  0x77   : > { %1465 = vrot.lane.b32.xlu0 %v1464_v19, %s1667_s24  ;;  %1470 = vrot.lane.b32.xlu1 %v1469_v58, %s1667_s24  ;;  %v1509_v19 = vpack.i.bf16 %v484_v59, %v483_v60  ;;  %v486_v13 = vmul.f32 %v1941_v42, %v1810_v62  ;;  %v433_v42 = vld [vmem:[%s2214_s1] sm:$0x1] }
  0x78   : > { %v358_v58 = vadd.f32 %v357_v4, %v356_v49  ;;  %v1514_v28 = vpack.i.bf16 %v502_v12, %v501_v5  ;;  %v1566_v4 = vpack.i.bf16 %v1824_v17, %v1817_v10 }
  0x79   : > { %v1519_v21 = vpack.i.bf16 %v486_v13, %v485_v27  ;;  %v1576_v27 = vpack.i.bf16 %v1838_v33, %v1831_v25 }
  0x7a   : > { %v359_v32 = vmax.f32 %v358_v58, 1e-24 }
  0x7b   : > { %1475 = vrot.lane.b32.xlu0 %v1474_v34, %s1667_s24  ;;  %1480 = vrot.lane.b32.xlu1 %v1479_v29, %s1667_s24  ;;  %v435_v34 = vlaneseq }
  0x7c   : > { %1649 = vrsqrt.f32 %v359_v32 }
  0x7d   : > { %v436_v35 = vshrl.u32 %v435_v34, 7 }
  0x7f   : > { %1485 = vrot.lane.b32.xlu0 %v1484_v15, %s1667_s24  ;;  %1490 = vrot.lane.b32.xlu1 %v1489_v24, %s1667_s24  ;;  %v437_v29 = vsub.s32 0, %v436_v35 }
  0x83   : > { %1495 = vrot.lane.b32.xlu0 %v1494_v52, %s1667_s24  ;;  %1500 = vrot.lane.b32.xlu1 %v1499_v43, %s1667_s24 }
  0x86   : > { %v1650_v37 = vpop.eup %1649 }
  0x87   : > { %1505 = vrot.lane.b32.xlu0 %v1504_v8, %s1667_s24  ;;  %1510 = vrot.lane.b32.xlu1 %v1509_v19, %s1667_s24  ;;  %v434_v45 = vmul.f32 %v1650_v37, %v433_v42  ;;  %v1571_v8 = vpack.i.bf16 %v1721_v1, %v1718_v0 }
  0x89   : > { %v2026_v41 = vrot.slane %v434_v45, %v437_v29 }
  0x8b   : > { %1515 = vrot.lane.b32.xlu0 %v1514_v28, %s1667_s24  ;;  %1520 = vrot.lane.b32.xlu1 %v1519_v21, %s1667_s24  ;;  %v439_v46 = vmul.f32 %v2026_v41, %v1718_v0  ;;  %v455_v53 = vmul.f32 %v2026_v41, %v1817_v10  ;;  %v440_v36 = vmul.f32 %v2026_v41, %v1721_v1 }
  0x8c   : > { %v456_v15 = vmul.f32 %v2026_v41, %v1824_v17  ;;  %v441_v6 = vmul.f32 %v2026_v41, %v1724_v2  ;;  %v457_v49 = vmul.f32 %v2026_v41, %v1831_v25  ;;  %v442_v16 = vmul.f32 %v2026_v41, %v1727_v3 }
  0x8d   : > { %v1524_v63 = vpack.i.bf16 %v439_v46, %v455_v53  ;;  %v458_v55 = vmul.f32 %v2026_v41, %v1838_v33  ;;  %v443_v60 = vmul.f32 %v2026_v41, %v1736_v7  ;;  %v459_v59 = vmul.f32 %v2026_v41, %v1845_v40 }
  0x8e   : > { %v1526_v24 = vpack.i.bf16 %v440_v36, %v456_v15  ;;  %v1528_v52 = vpack.i.bf16 %v441_v6, %v457_v49  ;;  %v444_v12 = vmul.f32 %v2026_v41, %v1741_v9  ;;  %v460_v19 = vmul.f32 %v2026_v41, %v1852_v47 }
  0x8f   : > { %v1530_v43 = vpack.i.bf16 %v442_v16, %v458_v55  ;;  %1567 = vrot.lane.b32.xlu1 %v1566_v4, %s1668_s27  ;;  %v1532_v5 = vpack.i.bf16 %v443_v60, %v459_v59  ;;  %v445_v17 = vmul.f32 %v2026_v41, %v1749_v14  ;;  %v461_v0 = vmul.f32 %v2026_v41, %v1859_v54 }
  0x90   : > { %v1534_v10 = vpack.i.bf16 %v444_v12, %v460_v19  ;;  %v1581_v1 = vpack.i.bf16 %v1727_v3, %v1724_v2  ;;  %v446_v58 = vmul.f32 %v2026_v41, %v1755_v18  ;;  %v462_v25 = vmul.f32 %v2026_v41, %v1866_v61 }
  0x91   : > { %v1536_v13 = vpack.i.bf16 %v445_v17, %v461_v0  ;;  %v1586_v33 = vpack.i.bf16 %v1852_v47, %v1845_v40  ;;  %v447_v21 = vmul.f32 %v2026_v41, %v1761_v22  ;;  %v463_v2 = vmul.f32 %v2026_v41, %v1873_v11 }
  0x92   : > { %v1538_v28 = vpack.i.bf16 %v446_v58, %v462_v25  ;;  %v1591_v3 = vpack.i.bf16 %v1741_v9, %v1736_v7  ;;  %v448_v34 = vmul.f32 %v2026_v41, %v1767_v26  ;;  %v464_v40 = vmul.f32 %v2026_v41, %v1880_v20 }
  0x93   : > { %1572 = vrot.lane.b32.xlu1 %v1571_v8, %s1668_s27  ;;  %v1540_v32 = vpack.i.bf16 %v447_v21, %v463_v2  ;;  %v1596_v47 = vpack.i.bf16 %v1866_v61, %v1859_v54  ;;  %v449_v37 = vmul.f32 %v2026_v41, %v1774_v31  ;;  %v465_v7 = vmul.f32 %v2026_v41, %v1887_v30 }
  0x94   : > { %v1542_v35 = vpack.i.bf16 %v448_v34, %v464_v40  ;;  %v1601_v9 = vpack.i.bf16 %v1755_v18, %v1749_v14  ;;  %v450_v29 = vmul.f32 %v2026_v41, %v1782_v38  ;;  %v466_v54 = vmul.f32 %v2026_v41, %v1894_v39 }
  0x95   : > { %v1544_v42 = vpack.i.bf16 %v449_v37, %v465_v7  ;;  %v451_v45 = vmul.f32 %v2026_v41, %v1789_v44  ;;  %v467_v46 = vmul.f32 %v2026_v41, %v1901_v48  ;;  %v452_v18 = vmul.f32 %v2026_v41, %v1796_v50 }
  0x96   : > { %v1546_v61 = vpack.i.bf16 %v450_v29, %v466_v54  ;;  %v468_v53 = vmul.f32 %v2026_v41, %v1908_v57  ;;  %v453_v36 = vmul.f32 %v2026_v41, %v1803_v56  ;;  %v469_v15 = vmul.f32 %v2026_v41, %v1915_v51 }
  0x97   : > { %1577 = vrot.lane.b32.xlu1 %v1576_v27, %s1668_s27  ;;  %v1548_v14 = vpack.i.bf16 %v451_v45, %v467_v46  ;;  %v454_v6 = vmul.f32 %v2026_v41, %v1810_v62  ;;  %v470_v49 = vmul.f32 %v2026_v41, %v1922_v23 }
  0x99   : > { %v1554_v55 = vpack.i.bf16 %v454_v6, %v470_v49 }
  0x9b   : > { %1582 = vrot.lane.b32.xlu1 %v1581_v1, %s1668_s27 }
  0x9f   : > { %1587 = vrot.lane.b32.xlu1 %v1586_v33, %s1668_s27 }
  0xa3   : > { %1592 = vrot.lane.b32.xlu1 %v1591_v3, %s1668_s27 }
  0xa7   : > { %1597 = vrot.lane.b32.xlu1 %v1596_v47, %s1668_s27 }
  0xa9   : > { %1525 = vxpose.xlu0.b32.start [1/16] (narrow) %v1524_v63, 16  ;;  %v1550_v63 = vpack.i.bf16 %v452_v18, %v468_v53 }
  0xab   : > { %1602 = vrot.lane.b32.xlu1 %v1601_v9, %s1668_s27 }
  0xad   : > { %1527 = vxpose.xlu0.b32.cont [2/16] (narrow) %v1526_v24, 16  ;;  %v1552_v24 = vpack.i.bf16 %v453_v36, %v469_v15 }
  0xb1   : > { %1529 = vxpose.xlu0.b32.cont [3/16] (narrow) %v1528_v52, 16 }
  0xb5   : > { %1531 = vxpose.xlu0.b32.cont [4/16] (narrow) %v1530_v43, 16 }
  0xb9   : > { %1533 = vxpose.xlu0.b32.cont [5/16] (narrow) %v1532_v5, 16 }
  0xbd   : > { %1535 = vxpose.xlu0.b32.cont [6/16] (narrow) %v1534_v10, 16 }
  0xc1   : > { %1537 = vxpose.xlu0.b32.cont [7/16] (narrow) %v1536_v13, 16 }
  0xc5   : > { %1539 = vxpose.xlu0.b32.cont [8/16] (narrow) %v1538_v28, 16 }
  0xc9   : > { %1541 = vxpose.xlu0.b32.cont [9/16] (narrow) %v1540_v32, 16 }
  0xcd   : > { %1543 = vxpose.xlu0.b32.cont [10/16] (narrow) %v1542_v35, 16 }
  0xd1   : > { %1545 = vxpose.xlu0.b32.cont [11/16] (narrow) %v1544_v42, 16 }
  0xd5   : > { %1547 = vxpose.xlu0.b32.cont [12/16] (narrow) %v1546_v61, 16 }
  0xd9   : > { %1549 = vxpose.xlu0.b32.cont [13/16] (narrow) %v1548_v14, 16 }
  0xdd   : > { %1551 = vxpose.xlu0.b32.cont [14/16] (narrow) %v1550_v63, 16 }
  0xe1   : > { %v1446_v52 = vpop.permute.xlu0 %1445  ;;  %1553 = vxpose.xlu0.b32.cont [15/16] (narrow) %v1552_v24, 16  ;;  %v1456_v16 = vpop.permute.xlu1 %1455 }
  0xe2   : > { %v1448_v43 = vunpack.i.h.bf16 %v1446_v52  ;;  %v1447_v60 = vunpack.i.l.bf16 %v1446_v52  ;;  %v1458_v59 = vunpack.i.h.bf16 %v1456_v16  ;;  %v1457_v4 = vunpack.i.l.bf16 %v1456_v16 }
  0xe4   : > { %v1348_v8 = vpack.c.bf16 %v1448_v43, %v1447_v60  ;;  %v1352_v0 = vpack.c.bf16 %v1458_v59, %v1457_v4 }
  0xe5   : > { %v1451_v5 = vpop.permute.xlu0 %1450  ;;  %1555 = vxpose.xlu0.b32.end [16/16] (narrow) %v1554_v55, 16  ;;  %v1461_v12 = vpop.permute.xlu1 %1460 }
  0xe6   : > { %v1453_v19 = vunpack.i.h.bf16 %v1451_v5  ;;  %v1452_v27 = vunpack.i.l.bf16 %v1451_v5  ;;  %1349 = vmatprep.subr.bf16.mxu0 %v1348_v8  ;;  %v1463_v10 = vunpack.i.h.bf16 %v1461_v12  ;;  %v1462_v17 = vunpack.i.l.bf16 %v1461_v12 }
  0xe8   : > { %v1350_v1 = vpack.c.bf16 %v1453_v19, %v1452_v27  ;;  %v1354_v41 = vpack.c.bf16 %v1463_v10, %v1462_v17 }
  0xe9   : > { %v1466_v13 = vpop.permute.xlu0 %1465  ;;  %v1471_v58 = vpop.permute.xlu1 %1470 }
  0xea   : > { %v1468_v25 = vunpack.i.h.bf16 %v1466_v13  ;;  %v1467_v33 = vunpack.i.l.bf16 %v1466_v13  ;;  %1351 = vmatpush3.bf16.msra.mxu0 %v1350_v1  ;;  %v1473_v28 = vunpack.i.h.bf16 %v1471_v58  ;;  %v1472_v21 = vunpack.i.l.bf16 %v1471_v58 }
  0xeb   : > { %1353 = vmatprep.subr.bf16.mxu0 %v1352_v0 }
  0xec   : > { %v1356_v2 = vpack.c.bf16 %v1468_v25, %v1467_v33  ;;  %v1358_v3 = vpack.c.bf16 %v1473_v28, %v1472_v21 }
  0xed   : > { %v1476_v32 = vpop.permute.xlu0 %1475  ;;  %v1481_v34 = vpop.permute.xlu1 %1480 }
  0xee   : > { %v1478_v40 = vunpack.i.h.bf16 %v1476_v32  ;;  %v1477_v47 = vunpack.i.l.bf16 %v1476_v32  ;;  %1355 = vmatpush3.bf16.msra.mxu0 %v1354_v41  ;;  %v1483_v35 = vunpack.i.h.bf16 %v1481_v34  ;;  %v1482_v37 = vunpack.i.l.bf16 %v1481_v34  ;;  %v1040_v34 = vld [vmem:[%s2217_s4 + $0x8] sm:$0xff] }
  0xef   : > { %1357 = vmatprep.subr.bf16.mxu0 %v1356_v2 }
  0xf0   : > { %v1360_v7 = vpack.c.bf16 %v1478_v40, %v1477_v47  ;;  %v1362_v9 = vpack.c.bf16 %v1483_v35, %v1482_v37 }
  0xf1   : > { %v1486_v42 = vpop.permute.xlu0 %1485  ;;  %v1491_v29 = vpop.permute.xlu1 %1490 }
  0xf2   : > { %v1488_v54 = vunpack.i.h.bf16 %v1486_v42  ;;  %v1487_v61 = vunpack.i.l.bf16 %v1486_v42  ;;  %1359 = vmatpush3.bf16.msra.mxu0 %v1358_v3  ;;  %v1493_v45 = vunpack.i.h.bf16 %v1491_v29  ;;  %v1492_v46 = vunpack.i.l.bf16 %v1491_v29 }
  0xf3   : > { %1361 = vmatprep.subr.bf16.mxu0 %v1360_v7 }
  0xf4   : > { %v1364_v14 = vpack.c.bf16 %v1488_v54, %v1487_v61  ;;  %v1366_v18 = vpack.c.bf16 %v1493_v45, %v1492_v46 }
  0xf5   : > { %v1496_v53 = vpop.permute.xlu0 %1495  ;;  %v1501_v63 = vpop.permute.xlu1 %1500 }
  0xf6   : > { %v1498_v36 = vunpack.i.h.bf16 %v1496_v53  ;;  %v1497_v15 = vunpack.i.l.bf16 %v1496_v53  ;;  %1363 = vmatpush3.bf16.msra.mxu0 %v1362_v9  ;;  %v1503_v24 = vunpack.i.h.bf16 %v1501_v63  ;;  %v1502_v6 = vunpack.i.l.bf16 %v1501_v63 }
  0xf7   : > { %1365 = vmatprep.subr.bf16.mxu0 %v1364_v14 }
  0xf8   : > { %v1368_v49 = vpack.c.bf16 %v1498_v36, %v1497_v15  ;;  %v1370_v52 = vpack.c.bf16 %v1503_v24, %v1502_v6 }
  0xf9   : > { %v1506_v16 = vpop.permute.xlu0 %1505  ;;  %v1511_v55 = vpop.permute.xlu1 %1510 }
  0xfa   : > { %v1508_v43 = vunpack.i.h.bf16 %v1506_v16  ;;  %v1507_v60 = vunpack.i.l.bf16 %v1506_v16  ;;  %1367 = vmatpush3.bf16.msra.mxu0 %v1366_v18  ;;  %v1513_v59 = vunpack.i.h.bf16 %v1511_v55  ;;  %v1512_v4 = vunpack.i.l.bf16 %v1511_v55 }
  0xfb   : > { %1369 = vmatprep.subr.bf16.mxu0 %v1368_v49 }
  0xfc   : > { %v1372_v8 = vpack.c.bf16 %v1508_v43, %v1507_v60  ;;  %v1374_v5 = vpack.c.bf16 %v1513_v59, %v1512_v4 }
  0xfd   : > { %v1516_v12 = vpop.permute.xlu0 %1515  ;;  %v1521_v19 = vpop.permute.xlu1 %1520 }
  0xfe   : > { %v1518_v27 = vunpack.i.h.bf16 %v1516_v12  ;;  %v1517_v10 = vunpack.i.l.bf16 %v1516_v12  ;;  %1371 = vmatpush3.bf16.msra.mxu0 %v1370_v52  ;;  %v1523_v17 = vunpack.i.h.bf16 %v1521_v19  ;;  %v1522_v0 = vunpack.i.l.bf16 %v1521_v19 }
  0xff   : > { %1373 = vmatprep.subr.bf16.mxu0 %v1372_v8  ;;  %v1626_v8 = vpack.i.bf16 %v1908_v57, %v1901_v48  ;;  %v504_v48 = vld [vmem:[%s2215_s2 + $0x8] sm:$0xff] }
 0x100   : > { %v1376_v1 = vpack.c.bf16 %v1518_v27, %v1517_v10  ;;  %v1378_v41 = vpack.c.bf16 %v1523_v17, %v1522_v0  ;;  %v503_v27 = vld [vmem:[%s2215_s2] sm:$0xff] }
 0x101   : > { %v1568_v2 = vpop.permute.xlu1 %1567 }
 0x102   : > { %1375 = vmatpush3.bf16.msra.mxu0 %v1374_v5  ;;  %v1570_v3 = vunpack.i.h.bf16 %v1568_v2  ;;  %v1569_v32 = vunpack.i.l.bf16 %v1568_v2 }
 0x103   : > { %1377 = vmatprep.subr.bf16.mxu0 %v1376_v1 }
 0x104   : > { %v1380_v40 = vpack.c.bf16 %v1570_v3, %v1569_v32 }
 0x105   : > { %v1573_v47 = vpop.permute.xlu1 %1572 }
 0x106   : > { %1379 = vmatpush3.bf16.msra.mxu0 %v1378_v41  ;;  %v1575_v35 = vunpack.i.h.bf16 %v1573_v47  ;;  %v1574_v37 = vunpack.i.l.bf16 %v1573_v47  ;;  %1382 = vmatprep.subr.msk.bf16.mxu1 %vm2118_vm2, %v1380_v40 }
 0x108   : > { %v1383_v7 = vpack.c.bf16 %v1575_v35, %v1574_v37 }
 0x109   : > { %v1578_v9 = vpop.permute.xlu1 %1577 }
 0x10a   : > { %v1580_v42 = vunpack.i.h.bf16 %v1578_v9  ;;  %v1579_v29 = vunpack.i.l.bf16 %v1578_v9  ;;  %1385 = vmatpush3.bf16.xpose.msk.msra.mxu1 %vm2118_vm2, %v1383_v7 }
 0x10c   : > { %v1386_v54 = vpack.c.bf16 %v1580_v42, %v1579_v29 }
 0x10d   : > { %v1583_v61 = vpop.permute.xlu1 %1582 }
 0x10e   : > { %v1585_v45 = vunpack.i.h.bf16 %v1583_v61  ;;  %v1584_v46 = vunpack.i.l.bf16 %v1583_v61  ;;  %1388 = vmatprep.subr.msk.bf16.mxu1 %vm2118_vm2, %v1386_v54  ;;  %1627 = vrot.lane.b32.xlu0 %v1626_v8, %s1668_s27 }
 0x110   : > { %v1389_v14 = vpack.c.bf16 %v1585_v45, %v1584_v46 }
 0x111   : > { %v1588_v18 = vpop.permute.xlu1 %1587 }
 0x112   : > { %v1590_v53 = vunpack.i.h.bf16 %v1588_v18  ;;  %v1589_v63 = vunpack.i.l.bf16 %v1588_v18  ;;  %1391 = vmatpush3.bf16.xpose.msk.msra.mxu1 %vm2118_vm2, %v1389_v14 }
 0x114   : > { %v1392_v36 = vpack.c.bf16 %v1590_v53, %v1589_v63 }
 0x115   : > { %v1593_v15 = vpop.permute.xlu1 %1592 }
 0x116   : > { %v1595_v24 = vunpack.i.h.bf16 %v1593_v15  ;;  %v1594_v6 = vunpack.i.l.bf16 %v1593_v15  ;;  %1394 = vmatprep.subr.msk.bf16.mxu1 %vm2118_vm2, %v1392_v36 }
 0x118   : > { %v1395_v49 = vpack.c.bf16 %v1595_v24, %v1594_v6 }
 0x119   : > { %v1598_v52 = vpop.permute.xlu1 %1597 }
 0x11a   : > { %v1600_v16 = vunpack.i.h.bf16 %v1598_v52  ;;  %v1599_v55 = vunpack.i.l.bf16 %v1598_v52  ;;  %1397 = vmatpush3.bf16.xpose.msk.msra.mxu1 %vm2118_vm2, %v1395_v49 }
 0x11c   : > { %v1398_v43 = vpack.c.bf16 %v1600_v16, %v1599_v55  ;;  %v1636_v16 = vpack.i.bf16 %v1922_v23, %v1915_v51  ;;  %v1641_v55 = vpack.i.bf16 %v1810_v62, %v1803_v56 }
 0x11d   : > { %v1603_v60 = vpop.permute.xlu1 %1602 }
 0x11e   : > { %v1605_v59 = vunpack.i.h.bf16 %v1603_v60  ;;  %v1604_v4 = vunpack.i.l.bf16 %v1603_v60  ;;  %1400 = vmatprep.subr.msk.bf16.mxu1 %vm2118_vm2, %v1398_v43  ;;  %v1037_v43 = vld [vmem:[%s2216_s3] sm:$0xff]  ;;  %v1038_v60 = vld [vmem:[%s2216_s3 + $0x8] sm:$0xff] }
 0x120   : > { %v1401_v5 = vpack.c.bf16 %v1605_v59, %v1604_v4 }
 0x122   : > { %1403 = vmatpush3.bf16.xpose.msk.msra.mxu1 %vm2118_vm2, %v1401_v5 }
 0x129   : > { %v1556_v13 = vpop.trf.xlu0 }
 0x12a   : > { %v1557_v58 = vunpack.i.l.bf16 %v1556_v13  ;;  %v1560_v25 = vunpack.i.h.bf16 %v1556_v13 }
 0x12c   : > { %761 = vmatprep.mubr.f32.mxu0 %v1557_v58 }
 0x12d   : > { %v1561_v33 = vpop.trf.xlu0  ;;  %762 = vmatmul.mubr.f32.vlgmr.msra.gmra.mrb[0].mxu0 %v1560_v25  ;;  %v1606_v25 = vpack.i.bf16 %v1880_v20, %v1873_v11  ;;  %v1631_v11 = vpack.i.bf16 %v1796_v50, %v1789_v44 }
 0x12e   : > { %v1562_v28 = vunpack.i.l.bf16 %v1561_v33  ;;  %v1565_v21 = vunpack.i.h.bf16 %v1561_v33  ;;  %v1611_v33 = vpack.i.bf16 %v1767_v26, %v1761_v22 }
 0x130   : > { %766 = vmatprep.mubr.f32.mxu0 %v1562_v28  ;;  %v1616_v28 = vpack.i.bf16 %v1894_v39, %v1887_v30 }
 0x131   : > { %767 = vmatmul.mubr.f32.gmra.mrb[2].mxu0 %v1565_v21  ;;  %v1621_v21 = vpack.i.bf16 %v1782_v38, %v1774_v31 }
 0x180   : > { %v1628_v37 = vpop.permute.xlu0 %1627 }
 0x181   : > { %v1630_v54 = vunpack.i.h.bf16 %v1628_v37  ;;  %v1629_v61 = vunpack.i.l.bf16 %v1628_v37 }
 0x183   : > { %v1416_v36 = vpack.c.bf16 %v1630_v54, %v1629_v61 }
 0x200   : > { %v1306_v12 = vpop.f32.mrb[0].mxu0 }
 0x201   : > { %v1307_v19 = vpop.f32.mrb[1].mxu0 }
 0x202   : > { %v1308_v10 = vadd.f32 %v1307_v19, %v1306_v12 }
 0x204   : > { %v1309_v17 = vpop.f32.mrb[2].mxu0  ;;  %v764_v0 = vadd.f32 %v1308_v10, %v503_v27 }
 0x205   : > { %v1310_v1 = vpop.f32.mrb[3].mxu0 }
 0x206   : > { %v1311_v57 = vadd.f32 %v1310_v1, %v1309_v17  ;;  %v772_v41 = vsel %vm289_vm1, %v764_v0, -inf  ;;  %v1669_v1 = vmov 0.0  }
 0x207   : > { %773 = vmax.xlane.f32.xlu1 %v772_v41  ;;  %1153 = vmatprep.mubr.f32.mxu0 %v1669_v1 }
 0x208   : > { %v769_v13 = vadd.f32 %v1311_v57, %v504_v48  ;;  %v1039_v48 = vld [vmem:[%s2217_s4] sm:$0xff]  ;;  %v1670_v57 = vmov 0  }
 0x209   : > { %1646 = vset.pattern.permute.xlu0 %v1670_v57 }
 0x20a   : > { %v775_v58 = vsel %vm289_vm1, %v769_v13, -inf }
 0x20b   : > { %776 = vmax.xlane.f32.xlu1 %v775_v58 }
 0x21c   : > { %1607 = vrot.lane.b32.xlu1 %v1606_v25, %s1668_s27 }
 0x220   : > { %1612 = vrot.lane.b32.xlu1 %v1611_v33, %s1668_s27 }
 0x224   : > { %1617 = vrot.lane.b32.xlu1 %v1616_v28, %s1668_s27 }
 0x228   : > { %1622 = vrot.lane.b32.xlu1 %v1621_v21, %s1668_s27 }
 0x22c   : > { %1632 = vrot.lane.b32.xlu1 %v1631_v11, %s1668_s27 }
 0x294   : > { %v774_v20 = vpop.xlane.xlu1 %773 }
 0x295   : > { %v778_v2 = vsub.f32 %v764_v0, %v774_v20 }
 0x297   : > { %v780_v22 = vmul.f32 1.442695, %v778_v2 }
 0x298   : > { %v777_v26 = vpop.xlane.xlu1 %776 }
 0x299   : > { %1651 = vpow2.f32 %v780_v22  ;;  %v779_v3 = vsub.f32 %v769_v13, %v777_v26 }
 0x29b   : > { %v782_v32 = vmul.f32 1.442695, %v779_v3 }
 0x29c   : > { %v1608_v30 = vpop.permute.xlu1 %1607 }
 0x29d   : > { %1653 = vpow2.f32 %v782_v32  ;;  %v1610_v39 = vunpack.i.h.bf16 %v1608_v30  ;;  %v1609_v40 = vunpack.i.l.bf16 %v1608_v30 }
 0x29f   : > { %v1404_v47 = vpack.c.bf16 %v1610_v39, %v1609_v40 }
 0x2a0   : > { %v1613_v31 = vpop.permute.xlu1 %1612 }
 0x2a1   : > { %v1615_v38 = vunpack.i.h.bf16 %v1613_v31  ;;  %v1614_v35 = vunpack.i.l.bf16 %v1613_v31  ;;  %1406 = vmatprep.subr.msk.bf16.mxu1 %vm2118_vm2, %v1404_v47 }
 0x2a3   : > { %v1652_v44 = vpop.eup %1651  ;;  %v1407_v50 = vpack.c.bf16 %v1615_v38, %v1614_v35 }
 0x2a4   : > { %v784_v7 = vsel %vm289_vm1, %v1652_v44, 0.0  ;;  %v1618_v9 = vpop.permute.xlu1 %1617 }
 0x2a5   : > { %785 = vadd.xlane.f32.xlu0 %v784_v7  ;;  %v1620_v42 = vunpack.i.h.bf16 %v1618_v9  ;;  %v1619_v29 = vunpack.i.l.bf16 %v1618_v9  ;;  %1409 = vmatpush3.bf16.xpose.msk.msra.mxu1 %vm2118_vm2, %v1407_v50 }
 0x2a7   : > { %v1654_v45 = vpop.eup %1653  ;;  %v1410_v46 = vpack.c.bf16 %v1620_v42, %v1619_v29 }
 0x2a8   : > { %v787_v14 = vsel %vm289_vm1, %v1654_v45, 0.0  ;;  %v1623_v18 = vpop.permute.xlu1 %1622 }
 0x2a9   : > { %788 = vadd.xlane.f32.xlu1 %v787_v14  ;;  %v1625_v53 = vunpack.i.h.bf16 %v1623_v18  ;;  %v1624_v63 = vunpack.i.l.bf16 %v1623_v18  ;;  %1412 = vmatprep.subr.msk.bf16.mxu1 %vm2118_vm2, %v1410_v46 }
 0x2ab   : > { %v1413_v15 = vpack.c.bf16 %v1625_v53, %v1624_v63 }
 0x2ac   : > { %v1633_v24 = vpop.permute.xlu1 %1632 }
 0x2ad   : > { %1415 = vmatpush3.bf16.xpose.msk.msra.mxu1 %vm2118_vm2, %v1413_v15  ;;  %v1635_v6 = vunpack.i.h.bf16 %v1633_v24  ;;  %v1634_v49 = vunpack.i.l.bf16 %v1633_v24 }
 0x2ae   : > { %1418 = vmatprep.subr.msk.bf16.mxu1 %vm2118_vm2, %v1416_v36 }
 0x2af   : > { %v1419_v52 = vpack.c.bf16 %v1635_v6, %v1634_v49 }
 0x2b5   : > { %1421 = vmatpush3.bf16.xpose.msk.msra.mxu1 %vm2118_vm2, %v1419_v52 }
 0x2ba   : > { %1637 = vrot.lane.b32.xlu1 %v1636_v16, %s1668_s27 }
 0x2bb   : > { %1642 = vrot.lane.b32.xlu0 %v1641_v55, %s1668_s27 }
 0x2bf   : > { %1043 = vperm.xlu0 %1646, %v1039_v48  }
 0x2c3   : > { %1048 = vperm.xlu0 %1646, %v1040_v34  }
 0x2e3   : > { %1051 = vxpose.xlu1.b32.start [1/2] (short) (narrow) %v1037_v43, 16 }
 0x2e7   : > { %1052 = vxpose.xlu1.b32.end [2/2] (short) (narrow) %v1038_v60, 16 }
 0x332   : > { %v786_v59 = vpop.xlane.xlu0 %785 }
 0x333   : > { %1655 = vrcp.f32 %v786_v59 }
 0x336   : > { %v789_v51 = vpop.xlane.xlu1 %788  ;;  %v1643_v23 = vpop.permute.xlu0 %1642 }
 0x337   : > { %v1645_v4 = vunpack.i.h.bf16 %v1643_v23  ;;  %v1644_v56 = vunpack.i.l.bf16 %v1643_v23  ;;  %1657 = vrcp.f32 %v789_v51 }
 0x339   : > { %v1425_v12 = vpack.c.bf16 %v1645_v4, %v1644_v56 }
 0x33a   : > { %v1638_v62 = vpop.permute.xlu1 %1637 }
 0x33b   : > { %v1640_v8 = vunpack.i.h.bf16 %v1638_v62  ;;  %v1639_v5 = vunpack.i.l.bf16 %v1638_v62 }
 0x33d   : > { %v1656_v19 = vpop.eup %1655  ;;  %v1422_v27 = vpack.c.bf16 %v1640_v8, %v1639_v5 }
 0x33e   : > { %v791_v10 = vmul.f32 %v1656_v19, %v1652_v44  ;;  %v1044_v20 = vpop.permute.xlu0 %1043 }
 0x33f   : > { %1424 = vmatprep.subr.msk.bf16.mxu1 %vm2118_vm2, %v1422_v27 }
 0x340   : > { %1427 = vmatpush3.bf16.xpose.msk.msra.mxu1 %vm2118_vm2, %v1425_v12  ;;  %1344 = vmatprep.mubr.msk.f32.mxu1 %vm289_vm1, %v791_v10 }
 0x341   : > { %v1658_v17 = vpop.eup %1657 }
 0x342   : > { %v793_v0 = vmul.f32 %v1658_v17, %v1654_v45  ;;  %v1049_v30 = vpop.permute.xlu0 %1048 }
 0x347   : > { %1345 = vmatmul.mubr.msk.f32.vlgmr.msra.gmra.mrb[0].mxu1 %vm289_vm1, %v791_v10 }
 0x348   : > { %1346 = vmatprep.mubr.msk.f32.mxu1 %vm289_vm1, %v793_v0 }
 0x34b   : > { %1347 = vmatmul.mubr.msk.f32.gmra.mrb[2].mxu1 %vm289_vm1, %v793_v0 }
 0x363   : > { %v1067_v21 = vpop.trf.xlu1 }
 0x367   : > { %v1068_v11 = vpop.trf.xlu1 }
 0x41a   : > { %v1026_v41 = vpop.f32.mrb[0].mxu1 }
 0x41b   : > { %v1028_v13 = vpop.f32.mrb[1].mxu1 }
 0x41e   : > { %v1032_v58 = vpop.f32.mrb[2].mxu1 }
 0x41f   : > { %v1430_v25 = vpack.c.bf16 %v1032_v58, %v1026_v41  ;;  %v1034_v33 = vpop.f32.mrb[3].mxu1 }
 0x420   : > { %v1428_v28 = vpack.c.bf16 %v1034_v33, %v1028_v13 }
 0x422   : > { %1429 = vmatprep.subr.bf16.mxu0 %v1428_v28 }
 0x423   : > { %1431 = vmatpush1.bf16.msra.mxu0 %v1430_v25 }
 0x426   : > { %1268 = vmatmul.mubr.msk.f32.vlgmr.msra.gmra.mrb[4].mxu0 %vm289_vm1, %v1067_v21 }
 0x427   : > { %1159 = vmatprep.mubr.f32.mxu0 %v1669_v1 }
 0x42a   : > { %1269 = vmatmul.mubr.msk.f32.gmra.mrb[6].mxu0 %vm289_vm1, %v1068_v11 }
 0x4f9   : > { %v1155_v2 = vpop.f32.mrb[4].mxu0 }
 0x4fa   : > { %v1156_v22 = vadd.f32 %v1155_v2, %v1044_v20  ;;  %v1157_v26 = vpop.f32.mrb[5].mxu0 }
 0x4fb   : > { %v1158_v3 = vadd.f32 %v1157_v26, %v1044_v20 }
 0x4fc   : > { %1166 = vst [vmem:[%s224_s20] sm:$0xff] %v1156_v22 }
 0x4fd   : > { %1167 = vst [vmem:[%s224_s20 + $0x8] sm:$0xff] %v1158_v3  ;;  %v1161_v32 = vpop.f32.mrb[6].mxu0 }
 0x4fe   : > { %v1162_v39 = vadd.f32 %v1161_v32, %v1049_v30  ;;  %v1163_v40 = vpop.f32.mrb[7].mxu0 }
 0x4ff   : > { %v1164_v47 = vadd.f32 %v1163_v40, %v1049_v30 }
 0x500   : > { %1168 = vst [vmem:[%s224_s20 + $0x10] sm:$0xff] %v1162_v39 }
 0x501   : > { %1169 = vst [vmem:[%s224_s20 + $0x18] sm:$0xff] %v1164_v47 }
 0x502 PF: > { %s15_s18 = sadd.s32 1, %s1665_s18  }
 0x503   : > { %p12_p4 = scmp.ge.s32.totalorder %s15_s18, 4  }
 0x505   :  { %14 = sbr.rel (!%p12_p4) target bundleno = 1 (0x1), region = 70 }

</bundles_post_ra>
